<compile_context>
chip_gen: v7x
topology: tpu7x:2x2x1
jax: 0.10.0
libtpu: 0.0.40
codegen_flags: <defaults>
</compile_context>

<pallas_src>
import jax
import jax.numpy as jnp
from jax.experimental import pallas as pl
from jax.experimental.pallas import tpu as pltpu


# ----------------------------- Pallas kernels ------------------------------ #

def _conv1_pool_relu_kernel(a_ref, w_ref, b_ref, o_ref):
    # One image per grid step.  a rows are ordered (dh, dw, i, j), so the 2x2
    # max-pool of the conv result is a max over 4 contiguous, aligned row blocks
    # and the pre-pool conv output never leaves VMEM.
    y = jnp.dot(a_ref[0], w_ref[...], preferred_element_type=jnp.float32)
    y = y + b_ref[...]
    r = o_ref.shape[1]
    m = jnp.maximum(jnp.maximum(y[0 * r:1 * r], y[1 * r:2 * r]),
                    jnp.maximum(y[2 * r:3 * r], y[3 * r:4 * r]))
    o_ref[0] = jnp.maximum(m, 0.0).astype(o_ref.dtype)


def conv1_pool_relu(a, w, b):
    B, M, K = a.shape
    N = w.shape[1]
    R = M // 4
    return pl.pallas_call(
        _conv1_pool_relu_kernel,
        grid=(B,),
        in_specs=[pl.BlockSpec((1, M, K), lambda i: (i, 0, 0)),
                  pl.BlockSpec((K, N), lambda i: (0, 0)),
                  pl.BlockSpec((1, N), lambda i: (0, 0))],
        out_specs=pl.BlockSpec((1, R, N), lambda i: (i, 0, 0)),
        out_shape=jax.ShapeDtypeStruct((B, R, N), jnp.bfloat16),
        compiler_params=pltpu.CompilerParams(dimension_semantics=("parallel",)),
    )(a, w, b)


def _conv2_head_kernel(a_ref, w2_ref, b2_ref, wf1_ref, bf1_ref, wf2_ref, bf2_ref,
                       logp_ref, x1_ref):
    # One image per grid step: conv2 + bias + 2x2 max-pool + relu + fc1 + relu
    # + fc2 + log_softmax, all in VMEM (no HBM round-trip of h2 / flat / x1).
    y = jnp.dot(a_ref[0], w2_ref[...], preferred_element_type=jnp.float32)
    y = y + b2_ref[...]
    npos = wf1_ref.shape[0]                      # 16 pooled spatial positions
    m = jnp.maximum(jnp.maximum(y[0 * npos:1 * npos], y[1 * npos:2 * npos]),
                    jnp.maximum(y[2 * npos:3 * npos], y[3 * npos:4 * npos]))
    # TODO(synk): Dropout2d after conv2 is identity in eval mode (training-mode
    # dropout not implemented).
    h2 = jnp.maximum(m, 0.0).astype(jnp.bfloat16)            # (npos, C2P)

    # fc1 without materializing the (1, npos*C2P) flatten: accumulate one small
    # matmul per spatial position against the per-position weight slab.
    acc = jnp.zeros((1, wf1_ref.shape[2]), jnp.float32)
    for p in range(npos):
        acc = acc + jnp.dot(h2[p:p + 1, :], wf1_ref[p],
                            preferred_element_type=jnp.float32)
    x1 = jnp.maximum(acc + bf1_ref[...], 0.0)                # (1, HP) f32
    x1_ref[0] = x1
    # TODO(synk): F.dropout(x1) is identity in eval mode.

    # fc2: padded class columns carry a -1e30 bias so they vanish from the
    # log_softmax normalizer without any in-kernel masking.
    logits = jnp.dot(x1.astype(jnp.bfloat16), wf2_ref[...],
                     preferred_element_type=jnp.float32) + bf2_ref[...]
    mx = jnp.max(logits, axis=1, keepdims=True)
    lse = jnp.log(jnp.sum(jnp.exp(logits - mx), axis=1, keepdims=True)) + mx
    logp_ref[0] = logits - lse


def conv2_fc_head(a2, w2, b2, wf1, bf1, wf2, bf2):
    B, M2, K2 = a2.shape
    P, C2P, HP = wf1.shape
    NCP = wf2.shape[1]
    return pl.pallas_call(
        _conv2_head_kernel,
        grid=(B,),
        in_specs=[pl.BlockSpec((1, M2, K2), lambda i: (i, 0, 0)),
                  pl.BlockSpec((K2, C2P), lambda i: (0, 0)),
                  pl.BlockSpec((1, C2P), lambda i: (0, 0)),
                  pl.BlockSpec((P, C2P, HP), lambda i: (0, 0, 0)),
                  pl.BlockSpec((1, HP), lambda i: (0, 0)),
                  pl.BlockSpec((HP, NCP), lambda i: (0, 0)),
                  pl.BlockSpec((1, NCP), lambda i: (0, 0))],
        out_specs=(pl.BlockSpec((1, 1, NCP), lambda i: (i, 0, 0)),
                   pl.BlockSpec((1, 1, HP), lambda i: (i, 0, 0))),
        out_shape=(jax.ShapeDtypeStruct((B, 1, NCP), jnp.float32),   # log_softmax(fc2)
                   jax.ShapeDtypeStruct((B, 1, HP), jnp.float32)),   # x1 = relu(fc1)
        compiler_params=pltpu.CompilerParams(dimension_semantics=("parallel",)),
    )(a2, w2, b2, wf1, bf1, wf2, bf2)


# ----------------------------- glue (plain JAX) ----------------------------- #

def _im2col_pool_order(x, k, k_pad=None):
    """x: (B, H, W, C) NHWC -> (B, 4*OHp*OWp, K) bf16 im2col matrix whose rows
    per image are ordered (dh, dw, oh_pooled, ow_pooled), so a 2x2/stride-2 pool
    of the conv result is a max over 4 contiguous row blocks in VMEM.
    Columns are (kh, kw, c), c fastest."""
    B, H, W, C = x.shape
    OH, OW = H - k + 1, W - k + 1
    OHp, OWp = OH // 2, OW // 2
    cols = [x[:, kh:kh + OH, kw:kw + OW, :] for kh in range(k) for kw in range(k)]
    a = jnp.concatenate(cols, axis=-1)                       # (B, OH, OW, k*k*C)
    kk = k * k * C
    if k_pad is not None and k_pad > kk:
        a = jnp.pad(a, ((0, 0), (0, 0), (0, 0), (0, k_pad - kk)))
    a = a.reshape(B, OHp, 2, OWp, 2, a.shape[-1])
    a = jnp.transpose(a, (0, 2, 4, 1, 3, 5))                 # (B, dh, dw, i, j, K)
    return a.reshape(B, 4 * OHp * OWp, a.shape[-1]).astype(jnp.bfloat16)


def init_params(key, num_channels, out_channels, num_classes):
    """Canonical (un-padded) parameters, matching the PyTorch module layout."""
    ks = jax.random.split(key, 8)
    s = 0.1
    fc1_in = int(320 / 20 * out_channels)
    return dict(
        w_conv1=jax.random.normal(ks[0], (5, 5, num_channels, 10), jnp.float32) * s,
        b_conv1=jax.random.normal(ks[1], (10,), jnp.float32) * s,
        w_conv2=jax.random.normal(ks[2], (5, 5, 10, out_channels), jnp.float32) * s,
        b_conv2=jax.random.normal(ks[3], (out_channels,), jnp.float32) * s,
        w_fc1=jax.random.normal(ks[4], (fc1_in, 50), jnp.float32) * s,
        b_fc1=jax.random.normal(ks[5], (50,), jnp.float32) * s,
        w_fc2=jax.random.normal(ks[6], (50, num_classes), jnp.float32) * s,
        b_fc2=jax.random.normal(ks[7], (num_classes,), jnp.float32) * s,
    )


def pack_params(p, *, c1p=16, c2p=32, hp=64, ncp=16, k1p=32):
    """One-time padding / permutation into kernel-friendly layouts (weights bf16,
    biases f32).  Minimal padding: conv1 ch 10->16, conv2 ch 20->32, hidden
    50->64, classes 10->16, conv1 K 25->32."""
    kh, kw, cin, c1 = p["w_conv1"].shape
    c2 = p["w_conv2"].shape[3]
    nh = p["w_fc1"].shape[1]
    nc = p["w_fc2"].shape[1]
    npos = p["w_fc1"].shape[0] // c2                 # 16 pooled spatial positions (4x4)
    taps = kh * kw                                   # 25
    assert c1 <= c1p and c2 <= c2p and nh <= hp and nc <= ncp and taps * cin <= k1p

    # conv1: (25*Cin -> pad 32) x (10 -> pad 16)
    w1 = jnp.zeros((k1p, c1p), jnp.float32)
    w1 = w1.at[:taps * cin, :c1].set(p["w_conv1"].reshape(taps * cin, c1))
    b1 = jnp.zeros((1, c1p), jnp.float32).at[0, :c1].set(p["b_conv1"])

    # conv2: (25*16 = 400) x (out_channels -> pad 32); input channels 10->16.
    w2 = jnp.zeros((taps, c1p, c2p), jnp.float32)
    w2 = w2.at[:, :c1, :c2].set(p["w_conv2"].reshape(taps, c1, c2))
    w2 = w2.reshape(taps * c1p, c2p)
    b2 = jnp.zeros((1, c2p), jnp.float32).at[0, :c2].set(p["b_conv2"])

    # fc1: rows permuted from PyTorch's NCHW flatten order (c*npos + pos) to a
    # per-position slab (pos, c, nh) so the kernel never materializes the flatten
    # and the contracted K is the real 16*32 = 512, not 2048.
    wf1_t = p["w_fc1"].reshape(c2, npos, nh).transpose(1, 0, 2)     # (pos, c, nh)
    wf1 = jnp.zeros((npos, c2p, hp), jnp.float32)
    wf1 = wf1.at[:, :c2, :nh].set(wf1_t)
    bf1 = jnp.zeros((1, hp), jnp.float32).at[0, :nh].set(p["b_fc1"])

    # fc2: padded class columns get a huge negative bias so they drop out of the
    # log_softmax normalizer.
    wf2 = jnp.zeros((hp, ncp), jnp.float32).at[:nh, :nc].set(p["w_fc2"])
    bf2 = jnp.full((1, ncp), -1e30, jnp.float32).at[0, :nc].set(p["b_fc2"])

    return dict(
        w1=w1.astype(jnp.bfloat16), b1=b1,
        w2=w2.astype(jnp.bfloat16), b2=b2,
        wf1=wf1.astype(jnp.bfloat16), bf1=bf1,
        wf2=wf2.astype(jnp.bfloat16), bf2=bf2,
        nh=nh, nc=nc, k1p=k1p, c1p=c1p)


def cnn_forward(packed, x_nchw):
    """Eval-mode forward.  Returns (log_softmax(fc2), x1=relu(fc1))."""
    x = jnp.transpose(x_nchw, (0, 2, 3, 1)).astype(jnp.float32)   # NCHW -> NHWC
    B, H = x.shape[0], x.shape[1]

    # stage 1: conv1 + bias + maxpool(2) + relu, one fused kernel, grid over batch
    a1 = _im2col_pool_order(x, 5, k_pad=packed["k1p"])            # (B, 4*144, 32) bf16
    h1 = conv1_pool_relu(a1, packed["w1"], packed["b1"])          # (B, 144, 16) bf16
    oh1 = (H - 4) // 2                                            # 12
    h1r = h1.reshape(B, oh1, oh1, packed["c1p"])                  # free XLA reshape

    # stages 2+3: conv2 + pool + relu + fc1 + relu + fc2 + log_softmax, one kernel
    a2 = _im2col_pool_order(h1r, 5)                               # (B, 64, 400) bf16
    logp, x1 = conv2_fc_head(a2, packed["w2"], packed["b2"],
                             packed["wf1"], packed["bf1"],
                             packed["wf2"], packed["bf2"])
    logp = logp.reshape(B, -1)[:, :packed["nc"]]
    x1 = x1.reshape(B, -1)[:, :packed["nh"]]
    return logp, x1


def cnn_forward_reference(params, x_nchw):
    """Pure-JAX f32 reference (lax.conv / reduce_window) for correctness check."""
    x = jnp.transpose(x_nchw, (0, 2, 3, 1)).astype(jnp.float32)
    dn = ("NHWC", "HWIO", "NHWC")

    def pool_relu(y):
        p = jax.lax.reduce_window(y, -jnp.inf, jax.lax.max,
                                  (1, 2, 2, 1), (1, 2, 2, 1), "VALID")
        return jax.nn.relu(p)

    y1 = jax.lax.conv_general_dilated(x, params["w_conv1"], (1, 1), "VALID",
                                      dimension_numbers=dn) + params["b_conv1"]
    h1 = pool_relu(y1)
    y2 = jax.lax.conv_general_dilated(h1, params["w_conv2"], (1, 1), "VALID",
                                      dimension_numbers=dn) + params["b_conv2"]
    h2 = pool_relu(y2)
    flat = jnp.transpose(h2, (0, 3, 1, 2)).reshape(x.shape[0], -1)   # NCHW flatten
    x1 = jax.nn.relu(flat @ params["w_fc1"] + params["b_fc1"])
    logits = x1 @ params["w_fc2"] + params["b_fc2"]
    return jax.nn.log_softmax(logits, axis=1), x1


# ---------------------------------- main ----------------------------------- #

if __name__ == "__main__":
    # args: num_channels=1, out_channels=20, num_classes=10.  Spatial size 28 so
    # the flatten matches fc1's 320 inputs (28 ->24 ->12 ->8 ->4; 20*4*4=320).
    B, C_IN, HW = 2, 1, 28
    OUT_CH, NUM_CLASSES = 20, 10

    x = jax.random.normal(jax.random.PRNGKey(0), (B, C_IN, HW, HW), jnp.float32)
    params = init_params(jax.random.PRNGKey(42), C_IN, OUT_CH, NUM_CLASSES)
    packed = pack_params(params)

    fwd = jax.jit(lambda inp: cnn_forward(packed, inp))
    logp, x1 = fwd(x)
    jax.block_until_ready((logp, x1))

    assert logp.shape == (B, NUM_CLASSES) and x1.shape == (B, 50)

    # bf16 activation/weight storage -> slightly looser tolerance than pure f32.
    ref_logp, ref_x1 = cnn_forward_reference(params, x)
    assert jnp.allclose(logp, ref_logp, atol=1e-1, rtol=1e-1), "log_softmax mismatch"
    assert jnp.allclose(x1, ref_x1, atol=1e-1, rtol=1e-1), "x1 mismatch"

    print("KERNEL_OK")
</pallas_src>

<mosaic_0001>
module attributes {stable_mosaic.version = 11 : i64} {
  func.func @_conv1_pool_relu_kernel(%arg0: i32, %arg1: memref<1x576x32xbf16, #tpu.memory_space<vmem>>, %arg2: memref<32x16xbf16, #tpu.memory_space<vmem>>, %arg3: memref<1x16xf32, #tpu.memory_space<vmem>>, %arg4: memref<1x144x16xbf16, #tpu.memory_space<vmem>>) attributes {dimension_semantics = [#tpu.dimension_semantics<parallel>], iteration_bounds = array<i64: 2>, scalar_prefetch = 0 : i64, scratch_operands = 0 : i64, tpu.core_type = #tpu.core_type<tc>, window_params = [{transform_indices = @transform_0, window_bounds = array<i64: 1, 576, 32>}, {pipeline_mode = #tpu.pipeline_mode<synchronous>, transform_indices = @transform_1, window_bounds = array<i64: 32, 16>}, {pipeline_mode = #tpu.pipeline_mode<synchronous>, transform_indices = @transform_2, window_bounds = array<i64: 1, 16>}, {transform_indices = @transform_3, window_bounds = array<i64: 1, 144, 16>}]} {
    %c0 = arith.constant 0 : index
    %c0_0 = arith.constant 0 : index
    %c0_1 = arith.constant 0 : index
    %0 = vector.load %arg1[%c0, %c0_0, %c0_1] : memref<1x576x32xbf16, #tpu.memory_space<vmem>>, vector<1x576x32xbf16>
    %1 = vector.shape_cast %0 : vector<1x576x32xbf16> to vector<576x32xbf16>
    %c0_2 = arith.constant 0 : index
    %c0_3 = arith.constant 0 : index
    %2 = vector.load %arg2[%c0_2, %c0_3] : memref<32x16xbf16, #tpu.memory_space<vmem>>, vector<32x16xbf16>
    %cst = arith.constant dense<0.000000e+00> : vector<576x16xf32>
    %3 = tpu.matmul %1, %2, %cst {dimension_numbers = #tpu.dot_dimension_numbers<[1], [0], [0], [1], [0, 0, 1, 1], [], []>} : vector<576x32xbf16>, vector<32x16xbf16>, vector<576x16xf32> -> vector<576x16xf32>
    %c0_4 = arith.constant 0 : index
    %c0_5 = arith.constant 0 : index
    %4 = vector.load %arg3[%c0_4, %c0_5] : memref<1x16xf32, #tpu.memory_space<vmem>>, vector<1x16xf32>
    %5 = vector.broadcast %4 : vector<1x16xf32> to vector<576x16xf32>
    %6 = arith.addf %3, %5 : vector<576x16xf32>
    %7 = vector.extract_strided_slice %6 {offsets = [0, 0], sizes = [144, 16], strides = [1, 1]} : vector<576x16xf32> to vector<144x16xf32>
    %8 = vector.extract_strided_slice %6 {offsets = [144, 0], sizes = [144, 16], strides = [1, 1]} : vector<576x16xf32> to vector<144x16xf32>
    %9 = arith.maximumf %7, %8 : vector<144x16xf32>
    %10 = vector.extract_strided_slice %6 {offsets = [288, 0], sizes = [144, 16], strides = [1, 1]} : vector<576x16xf32> to vector<144x16xf32>
    %11 = vector.extract_strided_slice %6 {offsets = [432, 0], sizes = [144, 16], strides = [1, 1]} : vector<576x16xf32> to vector<144x16xf32>
    %12 = arith.maximumf %10, %11 : vector<144x16xf32>
    %13 = arith.maximumf %9, %12 : vector<144x16xf32>
    %cst_6 = arith.constant 0.000000e+00 : f32
    %14 = vector.broadcast %cst_6 : f32 to vector<144x16xf32>
    %15 = arith.maximumf %13, %14 : vector<144x16xf32>
    %16 = arith.truncf %15 : vector<144x16xf32> to vector<144x16xbf16>
    %c0_7 = arith.constant 0 : index
    %c0_8 = arith.constant 0 : index
    %c0_9 = arith.constant 0 : index
    %17 = vector.load %arg4[%c0_7, %c0_8, %c0_9] : memref<1x144x16xbf16, #tpu.memory_space<vmem>>, vector<1x144x16xbf16>
    %18 = vector.shape_cast %17 : vector<1x144x16xbf16> to vector<144x16xbf16>
    %19 = vector.shape_cast %16 : vector<144x16xbf16> to vector<1x144x16xbf16>
    tpu.vector_store %arg4[%c0_7, %c0_8, %c0_9], %19 {strides = array<i32>} : memref<1x144x16xbf16, #tpu.memory_space<vmem>>, vector<1x144x16xbf16>,
    return
  }
  func.func @transform_0(%arg0: i32) -> (i32, i32, i32) {
    %c0_i32 = arith.constant 0 : i32
    %c0_i32_0 = arith.constant 0 : i32
    %c0_i32_1 = arith.constant 0 : i32
    return %arg0, %c0_i32, %c0_i32_0 : i32, i32, i32
  }
  func.func @transform_1(%arg0: i32) -> (i32, i32) {
    %c0_i32 = arith.constant 0 : i32
    %c0_i32_0 = arith.constant 0 : i32
    %c0_i32_1 = arith.constant 0 : i32
    return %c0_i32, %c0_i32_0 : i32, i32
  }
  func.func @transform_2(%arg0: i32) -> (i32, i32) {
    %c0_i32 = arith.constant 0 : i32
    %c0_i32_0 = arith.constant 0 : i32
    %c0_i32_1 = arith.constant 0 : i32
    return %c0_i32, %c0_i32_0 : i32, i32
  }
  func.func @transform_3(%arg0: i32) -> (i32, i32, i32) {
    %c0_i32 = arith.constant 0 : i32
    %c0_i32_0 = arith.constant 0 : i32
    %c0_i32_1 = arith.constant 0 : i32
    return %arg0, %c0_i32, %c0_i32_0 : i32, i32, i32
  }
}

module attributes {stable_mosaic.version = 11 : i64} {
  func.func @_conv2_head_kernel(%arg0: i32, %arg1: memref<1x64x400xbf16, #tpu.memory_space<vmem>>, %arg2: memref<400x32xbf16, #tpu.memory_space<vmem>>, %arg3: memref<1x32xf32, #tpu.memory_space<vmem>>, %arg4: memref<16x32x64xbf16, #tpu.memory_space<vmem>>, %arg5: memref<1x64xf32, #tpu.memory_space<vmem>>, %arg6: memref<64x16xbf16, #tpu.memory_space<vmem>>, %arg7: memref<1x16xf32, #tpu.memory_space<vmem>>, %arg8: memref<1x1x16xf32, #tpu.memory_space<vmem>>, %arg9: memref<1x1x64xf32, #tpu.memory_space<vmem>>) attributes {dimension_semantics = [#tpu.dimension_semantics<parallel>], iteration_bounds = array<i64: 2>, scalar_prefetch = 0 : i64, scratch_operands = 0 : i64, tpu.core_type = #tpu.core_type<tc>, window_params = [{transform_indices = @transform_0, window_bounds = array<i64: 1, 64, 400>}, {pipeline_mode = #tpu.pipeline_mode<synchronous>, transform_indices = @transform_1, window_bounds = array<i64: 400, 32>}, {pipeline_mode = #tpu.pipeline_mode<synchronous>, transform_indices = @transform_2, window_bounds = array<i64: 1, 32>}, {pipeline_mode = #tpu.pipeline_mode<synchronous>, transform_indices = @transform_3, window_bounds = array<i64: 16, 32, 64>}, {pipeline_mode = #tpu.pipeline_mode<synchronous>, transform_indices = @transform_4, window_bounds = array<i64: 1, 64>}, {pipeline_mode = #tpu.pipeline_mode<synchronous>, transform_indices = @transform_5, window_bounds = array<i64: 64, 16>}, {pipeline_mode = #tpu.pipeline_mode<synchronous>, transform_indices = @transform_6, window_bounds = array<i64: 1, 16>}, {transform_indices = @transform_7, window_bounds = array<i64: 1, 1, 16>}, {transform_indices = @transform_8, window_bounds = array<i64: 1, 1, 64>}]} {
    %c0 = arith.constant 0 : index
    %c0_0 = arith.constant 0 : index
    %c0_1 = arith.constant 0 : index
    %0 = vector.load %arg1[%c0, %c0_0, %c0_1] : memref<1x64x400xbf16, #tpu.memory_space<vmem>>, vector<1x64x400xbf16>
    %1 = vector.shape_cast %0 : vector<1x64x400xbf16> to vector<64x400xbf16>
    %c0_2 = arith.constant 0 : index
    %c0_3 = arith.constant 0 : index
    %2 = vector.load %arg2[%c0_2, %c0_3] : memref<400x32xbf16, #tpu.memory_space<vmem>>, vector<400x32xbf16>
    %cst = arith.constant dense<0.000000e+00> : vector<64x32xf32>
    %3 = tpu.matmul %1, %2, %cst {dimension_numbers = #tpu.dot_dimension_numbers<[1], [0], [0], [1], [0, 0, 1, 1], [], []>} : vector<64x400xbf16>, vector<400x32xbf16>, vector<64x32xf32> -> vector<64x32xf32>
    %c0_4 = arith.constant 0 : index
    %c0_5 = arith.constant 0 : index
    %4 = vector.load %arg3[%c0_4, %c0_5] : memref<1x32xf32, #tpu.memory_space<vmem>>, vector<1x32xf32>
    %5 = vector.broadcast %4 : vector<1x32xf32> to vector<64x32xf32>
    %6 = arith.addf %3, %5 : vector<64x32xf32>
    %7 = vector.extract_strided_slice %6 {offsets = [0, 0], sizes = [16, 32], strides = [1, 1]} : vector<64x32xf32> to vector<16x32xf32>
    %8 = vector.extract_strided_slice %6 {offsets = [16, 0], sizes = [16, 32], strides = [1, 1]} : vector<64x32xf32> to vector<16x32xf32>
    %9 = arith.maximumf %7, %8 : vector<16x32xf32>
    %10 = vector.extract_strided_slice %6 {offsets = [32, 0], sizes = [16, 32], strides = [1, 1]} : vector<64x32xf32> to vector<16x32xf32>
    %11 = vector.extract_strided_slice %6 {offsets = [48, 0], sizes = [16, 32], strides = [1, 1]} : vector<64x32xf32> to vector<16x32xf32>
    %12 = arith.maximumf %10, %11 : vector<16x32xf32>
    %13 = arith.maximumf %9, %12 : vector<16x32xf32>
    %cst_6 = arith.constant 0.000000e+00 : f32
    %14 = vector.broadcast %cst_6 : f32 to vector<16x32xf32>
    %15 = arith.maximumf %13, %14 : vector<16x32xf32>
    %16 = arith.truncf %15 : vector<16x32xf32> to vector<16x32xbf16>
    %cst_7 = arith.constant 0.000000e+00 : f32
    %17 = vector.broadcast %cst_7 : f32 to vector<1x64xf32>
    %18 = vector.extract_strided_slice %16 {offsets = [0, 0], sizes = [1, 32], strides = [1, 1]} : vector<16x32xbf16> to vector<1x32xbf16>
    %c0_8 = arith.constant 0 : index
    %c0_9 = arith.constant 0 : index
    %c0_10 = arith.constant 0 : index
    %19 = vector.load %arg4[%c0_8, %c0_9, %c0_10] : memref<16x32x64xbf16, #tpu.memory_space<vmem>>, vector<1x32x64xbf16>
    %20 = vector.shape_cast %19 : vector<1x32x64xbf16> to vector<32x64xbf16>
    %cst_11 = arith.constant dense<0.000000e+00> : vector<1x64xf32>
    %21 = tpu.matmul %18, %20, %cst_11 {dimension_numbers = #tpu.dot_dimension_numbers<[1], [0], [0], [1], [0, 0, 1, 1], [], []>} : vector<1x32xbf16>, vector<32x64xbf16>, vector<1x64xf32> -> vector<1x64xf32>
    %22 = arith.addf %17, %21 : vector<1x64xf32>
    %23 = vector.extract_strided_slice %16 {offsets = [1, 0], sizes = [1, 32], strides = [1, 1]} : vector<16x32xbf16> to vector<1x32xbf16>
    %c1 = arith.constant 1 : index
    %c0_12 = arith.constant 0 : index
    %c0_13 = arith.constant 0 : index
    %24 = vector.load %arg4[%c1, %c0_12, %c0_13] : memref<16x32x64xbf16, #tpu.memory_space<vmem>>, vector<1x32x64xbf16>
    %25 = vector.shape_cast %24 : vector<1x32x64xbf16> to vector<32x64xbf16>
    %cst_14 = arith.constant dense<0.000000e+00> : vector<1x64xf32>
    %26 = tpu.matmul %23, %25, %cst_14 {dimension_numbers = #tpu.dot_dimension_numbers<[1], [0], [0], [1], [0, 0, 1, 1], [], []>} : vector<1x32xbf16>, vector<32x64xbf16>, vector<1x64xf32> -> vector<1x64xf32>
    %27 = arith.addf %22, %26 : vector<1x64xf32>
    %28 = vector.extract_strided_slice %16 {offsets = [2, 0], sizes = [1, 32], strides = [1, 1]} : vector<16x32xbf16> to vector<1x32xbf16>
    %c2 = arith.constant 2 : index
    %c0_15 = arith.constant 0 : index
    %c0_16 = arith.constant 0 : index
    %29 = vector.load %arg4[%c2, %c0_15, %c0_16] : memref<16x32x64xbf16, #tpu.memory_space<vmem>>, vector<1x32x64xbf16>
    %30 = vector.shape_cast %29 : vector<1x32x64xbf16> to vector<32x64xbf16>
    %cst_17 = arith.constant dense<0.000000e+00> : vector<1x64xf32>
    %31 = tpu.matmul %28, %30, %cst_17 {dimension_numbers = #tpu.dot_dimension_numbers<[1], [0], [0], [1], [0, 0, 1, 1], [], []>} : vector<1x32xbf16>, vector<32x64xbf16>, vector<1x64xf32> -> vector<1x64xf32>
    %32 = arith.addf %27, %31 : vector<1x64xf32>
    %33 = vector.extract_strided_slice %16 {offsets = [3, 0], sizes = [1, 32], strides = [1, 1]} : vector<16x32xbf16> to vector<1x32xbf16>
    %c3 = arith.constant 3 : index
    %c0_18 = arith.constant 0 : index
    %c0_19 = arith.constant 0 : index
    %34 = vector.load %arg4[%c3, %c0_18, %c0_19] : memref<16x32x64xbf16, #tpu.memory_space<vmem>>, vector<1x32x64xbf16>
    %35 = vector.shape_cast %34 : vector<1x32x64xbf16> to vector<32x64xbf16>
    %cst_20 = arith.constant dense<0.000000e+00> : vector<1x64xf32>
    %36 = tpu.matmul %33, %35, %cst_20 {dimension_numbers = #tpu.dot_dimension_numbers<[1], [0], [0], [1], [0, 0, 1, 1], [], []>} : vector<1x32xbf16>, vector<32x64xbf16>, vector<1x64xf32> -> vector<1x64xf32>
    %37 = arith.addf %32, %36 : vector<1x64xf32>
    %38 = vector.extract_strided_slice %16 {offsets = [4, 0], sizes = [1, 32], strides = [1, 1]} : vector<16x32xbf16> to vector<1x32xbf16>
    %c4 = arith.constant 4 : index
    %c0_21 = arith.constant 0 : index
    %c0_22 = arith.constant 0 : index
    %39 = vector.load %arg4[%c4, %c0_21, %c0_22] : memref<16x32x64xbf16, #tpu.memory_space<vmem>>, vector<1x32x64xbf16>
    %40 = vector.shape_cast %39 : vector<1x32x64xbf16> to vector<32x64xbf16>
    %cst_23 = arith.constant dense<0.000000e+00> : vector<1x64xf32>
    %41 = tpu.matmul %38, %40, %cst_23 {dimension_numbers = #tpu.dot_dimension_numbers<[1], [0], [0], [1], [0, 0, 1, 1], [], []>} : vector<1x32xbf16>, vector<32x64xbf16>, vector<1x64xf32> -> vector<1x64xf32>
    %42 = arith.addf %37, %41 : vector<1x64xf32>
    %43 = vector.extract_strided_slice %16 {offsets = [5, 0], sizes = [1, 32], strides = [1, 1]} : vector<16x32xbf16> to vector<1x32xbf16>
    %c5 = arith.constant 5 : index
    %c0_24 = arith.constant 0 : index
    %c0_25 = arith.constant 0 : index
    %44 = vector.load %arg4[%c5, %c0_24, %c0_25] : memref<16x32x64xbf16, #tpu.memory_space<vmem>>, vector<1x32x64xbf16>
    %45 = vector.shape_cast %44 : vector<1x32x64xbf16> to vector<32x64xbf16>
    %cst_26 = arith.constant dense<0.000000e+00> : vector<1x64xf32>
    %46 = tpu.matmul %43, %45, %cst_26 {dimension_numbers = #tpu.dot_dimension_numbers<[1], [0], [0], [1], [0, 0, 1, 1], [], []>} : vector<1x32xbf16>, vector<32x64xbf16>, vector<1x64xf32> -> vector<1x64xf32>
    %47 = arith.addf %42, %46 : vector<1x64xf32>
    %48 = vector.extract_strided_slice %16 {offsets = [6, 0], sizes = [1, 32], strides = [1, 1]} : vector<16x32xbf16> to vector<1x32xbf16>
    %c6 = arith.constant 6 : index
    %c0_27 = arith.constant 0 : index
    %c0_28 = arith.constant 0 : index
    %49 = vector.load %arg4[%c6, %c0_27, %c0_28] : memref<16x32x64xbf16, #tpu.memory_space<vmem>>, vector<1x32x64xbf16>
    %50 = vector.shape_cast %49 : vector<1x32x64xbf16> to vector<32x64xbf16>
    %cst_29 = arith.constant dense<0.000000e+00> : vector<1x64xf32>
    %51 = tpu.matmul %48, %50, %cst_29 {dimension_numbers = #tpu.dot_dimension_numbers<[1], [0], [0], [1], [0, 0, 1, 1], [], []>} : vector<1x32xbf16>, vector<32x64xbf16>, vector<1x64xf32> -> vector<1x64xf32>
    %52 = arith.addf %47, %51 : vector<1x64xf32>
    %53 = vector.extract_strided_slice %16 {offsets = [7, 0], sizes = [1, 32], strides = [1, 1]} : vector<16x32xbf16> to vector<1x32xbf16>
    %c7 = arith.constant 7 : index
    %c0_30 = arith.constant 0 : index
    %c0_31 = arith.constant 0 : index
    %54 = vector.load %arg4[%c7, %c0_30, %c0_31] : memref<16x32x64xbf16, #tpu.memory_space<vmem>>, vector<1x32x64xbf16>
    %55 = vector.shape_cast %54 : vector<1x32x64xbf16> to vector<32x64xbf16>
    %cst_32 = arith.constant dense<0.000000e+00> : vector<1x64xf32>
    %56 = tpu.matmul %53, %55, %cst_32 {dimension_numbers = #tpu.dot_dimension_numbers<[1], [0], [0], [1], [0, 0, 1, 1], [], []>} : vector<1x32xbf16>, vector<32x64xbf16>, vector<1x64xf32> -> vector<1x64xf32>
    %57 = arith.addf %52, %56 : vector<1x64xf32>
    %58 = vector.extract_strided_slice %16 {offsets = [8, 0], sizes = [1, 32], strides = [1, 1]} : vector<16x32xbf16> to vector<1x32xbf16>
    %c8 = arith.constant 8 : index
    %c0_33 = arith.constant 0 : index
    %c0_34 = arith.constant 0 : index
    %59 = vector.load %arg4[%c8, %c0_33, %c0_34] : memref<16x32x64xbf16, #tpu.memory_space<vmem>>, vector<1x32x64xbf16>
    %60 = vector.shape_cast %59 : vector<1x32x64xbf16> to vector<32x64xbf16>
    %cst_35 = arith.constant dense<0.000000e+00> : vector<1x64xf32>
    %61 = tpu.matmul %58, %60, %cst_35 {dimension_numbers = #tpu.dot_dimension_numbers<[1], [0], [0], [1], [0, 0, 1, 1], [], []>} : vector<1x32xbf16>, vector<32x64xbf16>, vector<1x64xf32> -> vector<1x64xf32>
    %62 = arith.addf %57, %61 : vector<1x64xf32>
    %63 = vector.extract_strided_slice %16 {offsets = [9, 0], sizes = [1, 32], strides = [1, 1]} : vector<16x32xbf16> to vector<1x32xbf16>
    %c9 = arith.constant 9 : index
    %c0_36 = arith.constant 0 : index
    %c0_37 = arith.constant 0 : index
    %64 = vector.load %arg4[%c9, %c0_36, %c0_37] : memref<16x32x64xbf16, #tpu.memory_space<vmem>>, vector<1x32x64xbf16>
    %65 = vector.shape_cast %64 : vector<1x32x64xbf16> to vector<32x64xbf16>
    %cst_38 = arith.constant dense<0.000000e+00> : vector<1x64xf32>
    %66 = tpu.matmul %63, %65, %cst_38 {dimension_numbers = #tpu.dot_dimension_numbers<[1], [0], [0], [1], [0, 0, 1, 1], [], []>} : vector<1x32xbf16>, vector<32x64xbf16>, vector<1x64xf32> -> vector<1x64xf32>
    %67 = arith.addf %62, %66 : vector<1x64xf32>
    %68 = vector.extract_strided_slice %16 {offsets = [10, 0], sizes = [1, 32], strides = [1, 1]} : vector<16x32xbf16> to vector<1x32xbf16>
    %c10 = arith.constant 10 : index
    %c0_39 = arith.constant 0 : index
    %c0_40 = arith.constant 0 : index
    %69 = vector.load %arg4[%c10, %c0_39, %c0_40] : memref<16x32x64xbf16, #tpu.memory_space<vmem>>, vector<1x32x64xbf16>
    %70 = vector.shape_cast %69 : vector<1x32x64xbf16> to vector<32x64xbf16>
    %cst_41 = arith.constant dense<0.000000e+00> : vector<1x64xf32>
    %71 = tpu.matmul %68, %70, %cst_41 {dimension_numbers = #tpu.dot_dimension_numbers<[1], [0], [0], [1], [0, 0, 1, 1], [], []>} : vector<1x32xbf16>, vector<32x64xbf16>, vector<1x64xf32> -> vector<1x64xf32>
    %72 = arith.addf %67, %71 : vector<1x64xf32>
    %73 = vector.extract_strided_slice %16 {offsets = [11, 0], sizes = [1, 32], strides = [1, 1]} : vector<16x32xbf16> to vector<1x32xbf16>
    %c11 = arith.constant 11 : index
    %c0_42 = arith.constant 0 : index
    %c0_43 = arith.constant 0 : index
    %74 = vector.load %arg4[%c11, %c0_42, %c0_43] : memref<16x32x64xbf16, #tpu.memory_space<vmem>>, vector<1x32x64xbf16>
    %75 = vector.shape_cast %74 : vector<1x32x64xbf16> to vector<32x64xbf16>
    %cst_44 = arith.constant dense<0.000000e+00> : vector<1x64xf32>
    %76 = tpu.matmul %73, %75, %cst_44 {dimension_numbers = #tpu.dot_dimension_numbers<[1], [0], [0], [1], [0, 0, 1, 1], [], []>} : vector<1x32xbf16>, vector<32x64xbf16>, vector<1x64xf32> -> vector<1x64xf32>
    %77 = arith.addf %72, %76 : vector<1x64xf32>
    %78 = vector.extract_strided_slice %16 {offsets = [12, 0], sizes = [1, 32], strides = [1, 1]} : vector<16x32xbf16> to vector<1x32xbf16>
    %c12 = arith.constant 12 : index
    %c0_45 = arith.constant 0 : index
    %c0_46 = arith.constant 0 : index
    %79 = vector.load %arg4[%c12, %c0_45, %c0_46] : memref<16x32x64xbf16, #tpu.memory_space<vmem>>, vector<1x32x64xbf16>
    %80 = vector.shape_cast %79 : vector<1x32x64xbf16> to vector<32x64xbf16>
    %cst_47 = arith.constant dense<0.000000e+00> : vector<1x64xf32>
    %81 = tpu.matmul %78, %80, %cst_47 {dimension_numbers = #tpu.dot_dimension_numbers<[1], [0], [0], [1], [0, 0, 1, 1], [], []>} : vector<1x32xbf16>, vector<32x64xbf16>, vector<1x64xf32> -> vector<1x64xf32>
    %82 = arith.addf %77, %81 : vector<1x64xf32>
    %83 = vector.extract_strided_slice %16 {offsets = [13, 0], sizes = [1, 32], strides = [1, 1]} : vector<16x32xbf16> to vector<1x32xbf16>
    %c13 = arith.constant 13 : index
    %c0_48 = arith.constant 0 : index
    %c0_49 = arith.constant 0 : index
    %84 = vector.load %arg4[%c13, %c0_48, %c0_49] : memref<16x32x64xbf16, #tpu.memory_space<vmem>>, vector<1x32x64xbf16>
    %85 = vector.shape_cast %84 : vector<1x32x64xbf16> to vector<32x64xbf16>
    %cst_50 = arith.constant dense<0.000000e+00> : vector<1x64xf32>
    %86 = tpu.matmul %83, %85, %cst_50 {dimension_numbers = #tpu.dot_dimension_numbers<[1], [0], [0], [1], [0, 0, 1, 1], [], []>} : vector<1x32xbf16>, vector<32x64xbf16>, vector<1x64xf32> -> vector<1x64xf32>
    %87 = arith.addf %82, %86 : vector<1x64xf32>
    %88 = vector.extract_strided_slice %16 {offsets = [14, 0], sizes = [1, 32], strides = [1, 1]} : vector<16x32xbf16> to vector<1x32xbf16>
    %c14 = arith.constant 14 : index
    %c0_51 = arith.constant 0 : index
    %c0_52 = arith.constant 0 : index
    %89 = vector.load %arg4[%c14, %c0_51, %c0_52] : memref<16x32x64xbf16, #tpu.memory_space<vmem>>, vector<1x32x64xbf16>
    %90 = vector.shape_cast %89 : vector<1x32x64xbf16> to vector<32x64xbf16>
    %cst_53 = arith.constant dense<0.000000e+00> : vector<1x64xf32>
    %91 = tpu.matmul %88, %90, %cst_53 {dimension_numbers = #tpu.dot_dimension_numbers<[1], [0], [0], [1], [0, 0, 1, 1], [], []>} : vector<1x32xbf16>, vector<32x64xbf16>, vector<1x64xf32> -> vector<1x64xf32>
    %92 = arith.addf %87, %91 : vector<1x64xf32>
    %93 = vector.extract_strided_slice %16 {offsets = [15, 0], sizes = [1, 32], strides = [1, 1]} : vector<16x32xbf16> to vector<1x32xbf16>
    %c15 = arith.constant 15 : index
    %c0_54 = arith.constant 0 : index
    %c0_55 = arith.constant 0 : index
    %94 = vector.load %arg4[%c15, %c0_54, %c0_55] : memref<16x32x64xbf16, #tpu.memory_space<vmem>>, vector<1x32x64xbf16>
    %95 = vector.shape_cast %94 : vector<1x32x64xbf16> to vector<32x64xbf16>
    %cst_56 = arith.constant dense<0.000000e+00> : vector<1x64xf32>
    %96 = tpu.matmul %93, %95, %cst_56 {dimension_numbers = #tpu.dot_dimension_numbers<[1], [0], [0], [1], [0, 0, 1, 1], [], []>} : vector<1x32xbf16>, vector<32x64xbf16>, vector<1x64xf32> -> vector<1x64xf32>
    %97 = arith.addf %92, %96 : vector<1x64xf32>
    %c0_57 = arith.constant 0 : index
    %c0_58 = arith.constant 0 : index
    %98 = vector.load %arg5[%c0_57, %c0_58] : memref<1x64xf32, #tpu.memory_space<vmem>>, vector<1x64xf32>
    %99 = arith.addf %97, %98 : vector<1x64xf32>
    %cst_59 = arith.constant 0.000000e+00 : f32
    %100 = vector.broadcast %cst_59 : f32 to vector<1x64xf32>
    %101 = arith.maximumf %99, %100 : vector<1x64xf32>
    %c0_60 = arith.constant 0 : index
    %c0_61 = arith.constant 0 : index
    %c0_62 = arith.constant 0 : index
    %102 = vector.load %arg9[%c0_60, %c0_61, %c0_62] : memref<1x1x64xf32, #tpu.memory_space<vmem>>, vector<1x1x64xf32>
    %103 = vector.shape_cast %102 : vector<1x1x64xf32> to vector<1x64xf32>
    %104 = vector.shape_cast %101 : vector<1x64xf32> to vector<1x1x64xf32>
    tpu.vector_store %arg9[%c0_60, %c0_61, %c0_62], %104 {strides = array<i32>} : memref<1x1x64xf32, #tpu.memory_space<vmem>>, vector<1x1x64xf32>,
    %105 = arith.truncf %101 : vector<1x64xf32> to vector<1x64xbf16>
    %c0_63 = arith.constant 0 : index
    %c0_64 = arith.constant 0 : index
    %106 = vector.load %arg6[%c0_63, %c0_64] : memref<64x16xbf16, #tpu.memory_space<vmem>>, vector<64x16xbf16>
    %cst_65 = arith.constant dense<0.000000e+00> : vector<1x16xf32>
    %107 = tpu.matmul %105, %106, %cst_65 {dimension_numbers = #tpu.dot_dimension_numbers<[1], [0], [0], [1], [0, 0, 1, 1], [], []>} : vector<1x64xbf16>, vector<64x16xbf16>, vector<1x16xf32> -> vector<1x16xf32>
    %c0_66 = arith.constant 0 : index
    %c0_67 = arith.constant 0 : index
    %108 = vector.load %arg7[%c0_66, %c0_67] : memref<1x16xf32, #tpu.memory_space<vmem>>, vector<1x16xf32>
    %109 = arith.addf %107, %108 : vector<1x16xf32>
    %cst_68 = arith.constant dense<0xFF800000> : vector<1xf32>
    %110 = vector.multi_reduction <maximumf>, %109, %cst_68 [1] : vector<1x16xf32> to vector<1xf32>
    %111 = vector.shape_cast %110 : vector<1xf32> to vector<1x1xf32>
    %112 = vector.broadcast %111 : vector<1x1xf32> to vector<1x16xf32>
    %113 = arith.subf %109, %112 : vector<1x16xf32>
    %114 = math.exp %113 : vector<1x16xf32>
    %cst_69 = arith.constant dense<0.000000e+00> : vector<1xf32>
    %115 = vector.multi_reduction <add>, %114, %cst_69 [1] : vector<1x16xf32> to vector<1xf32>
    %116 = vector.shape_cast %115 : vector<1xf32> to vector<1x1xf32>
    %117 = math.log %116 : vector<1x1xf32>
    %118 = arith.addf %117, %111 : vector<1x1xf32>
    %119 = vector.broadcast %118 : vector<1x1xf32> to vector<1x16xf32>
    %120 = arith.subf %109, %119 : vector<1x16xf32>
    %c0_70 = arith.constant 0 : index
    %c0_71 = arith.constant 0 : index
    %c0_72 = arith.constant 0 : index
    %121 = vector.load %arg8[%c0_70, %c0_71, %c0_72] : memref<1x1x16xf32, #tpu.memory_space<vmem>>, vector<1x1x16xf32>
    %122 = vector.shape_cast %121 : vector<1x1x16xf32> to vector<1x16xf32>
    %123 = vector.shape_cast %120 : vector<1x16xf32> to vector<1x1x16xf32>
    tpu.vector_store %arg8[%c0_70, %c0_71, %c0_72], %123 {strides = array<i32>} : memref<1x1x16xf32, #tpu.memory_space<vmem>>, vector<1x1x16xf32>,
    return
  }
  func.func @transform_0(%arg0: i32) -> (i32, i32, i32) {
    %c0_i32 = arith.constant 0 : i32
    %c0_i32_0 = arith.constant 0 : i32
    %c0_i32_1 = arith.constant 0 : i32
    return %arg0, %c0_i32, %c0_i32_0 : i32, i32, i32
  }
  func.func @transform_1(%arg0: i32) -> (i32, i32) {
    %c0_i32 = arith.constant 0 : i32
    %c0_i32_0 = arith.constant 0 : i32
    %c0_i32_1 = arith.constant 0 : i32
    return %c0_i32, %c0_i32_0 : i32, i32
  }
  func.func @transform_2(%arg0: i32) -> (i32, i32) {
    %c0_i32 = arith.constant 0 : i32
    %c0_i32_0 = arith.constant 0 : i32
    %c0_i32_1 = arith.constant 0 : i32
    return %c0_i32, %c0_i32_0 : i32, i32
  }
  func.func @transform_3(%arg0: i32) -> (i32, i32, i32) {
    %c0_i32 = arith.constant 0 : i32
    %c0_i32_0 = arith.constant 0 : i32
    %c0_i32_1 = arith.constant 0 : i32
    %c0_i32_2 = arith.constant 0 : i32
    return %c0_i32, %c0_i32_0, %c0_i32_1 : i32, i32, i32
  }
  func.func @transform_4(%arg0: i32) -> (i32, i32) {
    %c0_i32 = arith.constant 0 : i32
    %c0_i32_0 = arith.constant 0 : i32
    %c0_i32_1 = arith.constant 0 : i32
    return %c0_i32, %c0_i32_0 : i32, i32
  }
  func.func @transform_5(%arg0: i32) -> (i32, i32) {
    %c0_i32 = arith.constant 0 : i32
    %c0_i32_0 = arith.constant 0 : i32
    %c0_i32_1 = arith.constant 0 : i32
    return %c0_i32, %c0_i32_0 : i32, i32
  }
  func.func @transform_6(%arg0: i32) -> (i32, i32) {
    %c0_i32 = arith.constant 0 : i32
    %c0_i32_0 = arith.constant 0 : i32
    %c0_i32_1 = arith.constant 0 : i32
    return %c0_i32, %c0_i32_0 : i32, i32
  }
  func.func @transform_7(%arg0: i32) -> (i32, i32, i32) {
    %c0_i32 = arith.constant 0 : i32
    %c0_i32_0 = arith.constant 0 : i32
    %c0_i32_1 = arith.constant 0 : i32
    return %arg0, %c0_i32, %c0_i32_0 : i32, i32, i32
  }
  func.func @transform_8(%arg0: i32) -> (i32, i32, i32) {
    %c0_i32 = arith.constant 0 : i32
    %c0_i32_0 = arith.constant 0 : i32
    %c0_i32_1 = arith.constant 0 : i32
    return %arg0, %c0_i32, %c0_i32_0 : i32, i32, i32
  }
}

</mosaic_0001>

<bundles_post_ra>
// kernel: _lambda_.2
= control target key start
LH: loop header
LB: loop body
LE: loop exit
PB: predicated region body
PF: predicated region fallthrough
CT: control target
= control target key end

     0   :  { %s1409_s12 = smov 0   ;;  %s1727_s0 = inlined_call_operand.vmem [shape: bf16[2,576,32], index: 0, kind: input, shape index: {}]   ;;  %s1728_s1 = inlined_call_operand.vmem [shape: bf16[32,16], index: 1, kind: input, shape index: {}]   ;;  %s1729_s2 = inlined_call_operand.vmem [shape: f32[1,16], index: 2, kind: input, shape index: {}]   ;;  %s1730_s3 = inlined_call_operand.vmem [shape: bf16[2,144,16], index: 3, kind: output, shape index: {}]  }
   0x1 LB: > { %s1095_s13 = sadd.s32 4294967295, %s1387_s12   ;;  %p1099_p0 = scmp.ge.s32.totalorder %s1387_s12, 1  ;;  %s1387_s12 = sphi %s1409_s12, %s13_s12  }
   0x2   : > { %p137_p1 = scmp.lt.s32.totalorder %s1387_s12, 3 }
   0x4   : > { %p138_p2 = pnand %p1099_p0, %p137_p1 }
   0x5   : > { %v1343_v0 = vld [vmem:[%s1728_s1] sm:$0xff] (!%p138_p2)   ;;  %p161_p3 = scmp.lt.s32.totalorder (!%p138_p2), %s1095_s13, 1  ;;  %v1344_v1 = vld [vmem:[%s1728_s1 + $0x8] sm:$0xff] (!%p138_p2)   ;;  %vm447_vm0 = vcmask (!%p138_p2), 261120   ;;  %vm1021_vm1 = vcmask (!%p138_p2), 125952  }
   0x6   : > { %141 = sbr.rel (%p138_p2) target bundleno = 311 (0x137), region = 32  ;;  %1253 = vmatprep.subr.bf16.mxu0 (!%p138_p2), %v1343_v0  ;;  %1329 = vmatprep.subr.bf16.mxu1 (!%p138_p2), %v1343_v0 }
   0x7   : > { %1254 = vmatpush3.bf16.msra.mxu0 (!%p138_p2), %v1343_v0  ;;  %1331 = vmatpush3.bf16.msra.mxu1 (!%p138_p2), %v1343_v0 }
   0x8   : > { %1255 = vmatprep.subr.bf16.mxu0 (!%p138_p2), %v1344_v1  ;;  %1330 = vmatprep.subr.bf16.mxu1 (!%p138_p2), %v1344_v1 }
   0xb   : > { %1256 = vmatpush3.bf16.msra.mxu0 (!%p138_p2), %v1344_v1  ;;  %1332 = vmatpush3.bf16.msra.mxu1 (!%p138_p2), %v1344_v1 }
   0xd   : > { %s1732_s13 = smov (!%p161_p3, %s1095_s13), 1 }
   0xe   : > { %s1333_s18 = smul.u32 288, %s1732_s13 }
   0xf   : > { %s1334_s24 = smul.u32 72, %s1732_s13 }
  0x10   : > { %s1429_s21 = scalar_lea.vmem %s1727_s0, %s1333_s18 }
  0x11   : > { %v1345_v2 = vld [vmem:[%s1429_s21] sm:$0xff]   ;;  %v1346_v3 = vld [vmem:[%s1429_s21 + $0x90] sm:$0xff]   ;;  %v1347_v4 = vld [vmem:[%s1429_s21 + $0x8] sm:$0xff]   ;;  %s1590_s27 = scalar_lea.vmem %s1730_s3, %s1334_s24 }
  0x12   : > { %1257 = vmatprep.mubr.msk.bf16.mxu0 %vm447_vm0, %v1345_v2  ;;  %1293 = vmatprep.mubr.msk.bf16.mxu1 %vm447_vm0, %v1346_v3  ;;  %v1348_v5 = vld [vmem:[%s1429_s21 + $0x98] sm:$0xff]   ;;  %v1349_v6 = vld [vmem:[%s1429_s21 + $0x10] sm:$0xff]   ;;  %v1350_v7 = vld [vmem:[%s1429_s21 + $0xa0] sm:$0xff]  }
  0x13   : > { %1258 = vmatmul.mubr.msk.bf16.vlgmr.msra.gmra.mrb[0].mxu0 %vm447_vm0, %v1347_v4  ;;  %1294 = vmatmul.mubr.msk.bf16.vlgmr.msra.gmra.mrb[0].mxu1 %vm447_vm0, %v1348_v5  ;;  %v1351_v8 = vld [vmem:[%s1429_s21 + $0x18] sm:$0xff]   ;;  %v1352_v9 = vld [vmem:[%s1429_s21 + $0xa8] sm:$0xff]   ;;  %v1353_v10 = vld [vmem:[%s1429_s21 + $0x20] sm:$0xff]  }
  0x14   : > { %1261 = vmatprep.mubr.msk.bf16.mxu0 %vm447_vm0, %v1349_v6  ;;  %1297 = vmatprep.mubr.msk.bf16.mxu1 %vm447_vm0, %v1350_v7  ;;  %v1354_v11 = vld [vmem:[%s1429_s21 + $0xb0] sm:$0xff]   ;;  %v1355_v12 = vld [vmem:[%s1429_s21 + $0x28] sm:$0xff]   ;;  %v1356_v13 = vld [vmem:[%s1429_s21 + $0xb8] sm:$0xff]  }
  0x15   : > { %v1357_v14 = vld [vmem:[%s1429_s21 + $0x30] sm:$0xff]   ;;  %v1358_v15 = vld [vmem:[%s1429_s21 + $0xc0] sm:$0xff]   ;;  %v1359_v16 = vld [vmem:[%s1429_s21 + $0x38] sm:$0xff]  }
  0x16   : > { %v1360_v17 = vld [vmem:[%s1429_s21 + $0xc8] sm:$0xff]   ;;  %v1361_v18 = vld [vmem:[%s1429_s21 + $0x40] sm:$0xff]   ;;  %v1362_v19 = vld [vmem:[%s1429_s21 + $0xd0] sm:$0xff]  }
  0x17   : > { %v1363_v20 = vld [vmem:[%s1429_s21 + $0x48] sm:$0xff]   ;;  %v1364_v21 = vld [vmem:[%s1429_s21 + $0xd8] sm:$0xff]   ;;  %v1365_v22 = vld [vmem:[%s1429_s21 + $0x50] sm:$0xff]  }
  0x18   : > { %v1366_v23 = vld [vmem:[%s1429_s21 + $0xe0] sm:$0xff]   ;;  %v1367_v24 = vld [vmem:[%s1429_s21 + $0x58] sm:$0xff]   ;;  %v1368_v25 = vld [vmem:[%s1429_s21 + $0xe8] sm:$0xff]  }
  0x19   : > { %v1369_v26 = vld [vmem:[%s1429_s21 + $0x60] sm:$0xff]   ;;  %v1370_v27 = vld [vmem:[%s1429_s21 + $0xf0] sm:$0xff]   ;;  %v1371_v28 = vld [vmem:[%s1429_s21 + $0x68] sm:$0xff]  }
  0x1a   : > { %v1372_v29 = vld [vmem:[%s1429_s21 + $0xf8] sm:$0xff]   ;;  %v1373_v30 = vld [vmem:[%s1429_s21 + $0x70] sm:$0xff]   ;;  %v1374_v31 = vld [vmem:[%s1429_s21 + $0x100] sm:$0xff]  }
  0x1b   : > { %1262 = vmatmul.mubr.msk.bf16.gmra.mrb[4].mxu0 %vm447_vm0, %v1351_v8  ;;  %1298 = vmatmul.mubr.msk.bf16.gmra.mrb[4].mxu1 %vm447_vm0, %v1352_v9  ;;  %v1375_v32 = vld [vmem:[%s1429_s21 + $0x78] sm:$0xff]   ;;  %v1376_v33 = vld [vmem:[%s1429_s21 + $0x108] sm:$0xff]   ;;  %v1377_v34 = vld [vmem:[%s1429_s21 + $0x80] sm:$0xff]  }
  0x1c   : > { %1265 = vmatprep.mubr.msk.bf16.mxu0 %vm447_vm0, %v1353_v10  ;;  %1301 = vmatprep.mubr.msk.bf16.mxu1 %vm447_vm0, %v1354_v11  ;;  %v1378_v35 = vld [vmem:[%s1429_s21 + $0x110] sm:$0xff]   ;;  %v1379_v36 = vld [vmem:[%s1429_s21 + $0x88] sm:$0xff]   ;;  %v1380_v37 = vld [vmem:[%s1429_s21 + $0x118] sm:$0xff]  }
  0x1d   : > { %v1530_v6 = vld [vmem:[%s1729_s2] ss:$0 sm:$0xff] }
  0x23   : > { %1266 = vmatmul.mubr.msk.bf16.gmra.mrb[8].mxu0 %vm447_vm0, %v1355_v12  ;;  %1302 = vmatmul.mubr.msk.bf16.gmra.mrb[8].mxu1 %vm447_vm0, %v1356_v13 }
  0x24   : > { %1269 = vmatprep.mubr.msk.bf16.mxu0 %vm447_vm0, %v1357_v14  ;;  %1305 = vmatprep.mubr.msk.bf16.mxu1 %vm447_vm0, %v1358_v15 }
  0x2b   : > { %1270 = vmatmul.mubr.msk.bf16.gmra.mrb[12].mxu0 %vm447_vm0, %v1359_v16  ;;  %1306 = vmatmul.mubr.msk.bf16.gmra.mrb[12].mxu1 %vm447_vm0, %v1360_v17 }
  0x2c   : > { %1273 = vmatprep.mubr.msk.bf16.mxu0 %vm447_vm0, %v1361_v18  ;;  %1309 = vmatprep.mubr.msk.bf16.mxu1 %vm447_vm0, %v1362_v19 }
  0x33   : > { %1274 = vmatmul.mubr.msk.bf16.gmra.mrb[16].mxu0 %vm447_vm0, %v1363_v20  ;;  %1310 = vmatmul.mubr.msk.bf16.gmra.mrb[16].mxu1 %vm447_vm0, %v1364_v21 }
  0x34   : > { %1277 = vmatprep.mubr.msk.bf16.mxu0 %vm447_vm0, %v1365_v22  ;;  %1313 = vmatprep.mubr.msk.bf16.mxu1 %vm447_vm0, %v1366_v23 }
  0x3b   : > { %1278 = vmatmul.mubr.msk.bf16.gmra.mrb[20].mxu0 %vm447_vm0, %v1367_v24  ;;  %1314 = vmatmul.mubr.msk.bf16.gmra.mrb[20].mxu1 %vm447_vm0, %v1368_v25 }
  0x3c   : > { %1281 = vmatprep.mubr.msk.bf16.mxu0 %vm447_vm0, %v1369_v26  ;;  %1317 = vmatprep.mubr.msk.bf16.mxu1 %vm447_vm0, %v1370_v27 }
  0x43   : > { %1282 = vmatmul.mubr.msk.bf16.gmra.mrb[24].mxu0 %vm447_vm0, %v1371_v28  ;;  %1318 = vmatmul.mubr.msk.bf16.gmra.mrb[24].mxu1 %vm447_vm0, %v1372_v29 }
  0x44   : > { %1285 = vmatprep.mubr.msk.bf16.mxu0 %vm447_vm0, %v1373_v30  ;;  %1321 = vmatprep.mubr.msk.bf16.mxu1 %vm447_vm0, %v1374_v31 }
  0x4b   : > { %1286 = vmatmul.mubr.msk.bf16.gmra.mrb[28].mxu0 %vm447_vm0, %v1375_v32  ;;  %1322 = vmatmul.mubr.msk.bf16.gmra.mrb[28].mxu1 %vm447_vm0, %v1376_v33 }
  0x4c   : > { %1289 = vmatprep.mubr.msk.bf16.mxu0 %vm447_vm0, %v1377_v34  ;;  %1325 = vmatprep.mubr.msk.bf16.mxu1 %vm447_vm0, %v1378_v35 }
  0x53   : > { %1290 = vmatmul.mubr.msk.bf16.gmra.mrb[32].mxu0 %vm447_vm0, %v1379_v36  ;;  %1326 = vmatmul.mubr.msk.bf16.gmra.mrb[32].mxu1 %vm447_vm0, %v1380_v37 }
  0xe6   : > { %v1259_v38 = vpop.f32.mrb[0].mxu0  ;;  %v1295_v39 = vpop.f32.mrb[0].mxu1 }
  0xe7   : > { %v590_v40 = vpop.f32.mrb[1].mxu0  ;;  %v734_v41 = vpop.f32.mrb[1].mxu1  ;;  %v1541_v16 = vadd.f32 %v1259_v38, %v1530_v6  ;;  %v743_v22 = vadd.f32 %v1295_v39, %v1530_v6 }
  0xe8   : > { %v1260_v42 = vpop.f32.mrb[2].mxu0  ;;  %v1296_v43 = vpop.f32.mrb[2].mxu1  ;;  %v591_v8 = vadd.f32 %v1530_v6, %v590_v40  ;;  %v735_v12 = vadd.f32 %v1530_v6, %v734_v41 }
  0xe9   : > { %v593_v44 = vpop.f32.mrb[3].mxu0  ;;  %v737_v45 = vpop.f32.mrb[3].mxu1  ;;  %v1553_v27 = vadd.f32 %v1260_v42, %v1530_v6  ;;  %v1556_v28 = vadd.f32 %v1296_v43, %v1530_v6 }
  0xea   : > { %v594_v17 = vadd.f32 %v1530_v6, %v593_v44  ;;  %v738_v23 = vadd.f32 %v1530_v6, %v737_v45 }
  0xee   : > { %v1263_v46 = vpop.f32.mrb[4].mxu0  ;;  %v1299_v47 = vpop.f32.mrb[4].mxu1 }
  0xef   : > { %v606_v48 = vpop.f32.mrb[5].mxu0  ;;  %v750_v49 = vpop.f32.mrb[5].mxu1  ;;  %v1559_v29 = vadd.f32 %v1263_v46, %v1530_v6  ;;  %v1563_v31 = vadd.f32 %v1299_v47, %v1530_v6 }
  0xf0   : > { %v1264_v50 = vpop.f32.mrb[6].mxu0  ;;  %v1300_v51 = vpop.f32.mrb[6].mxu1  ;;  %v607_v32 = vadd.f32 %v1530_v6, %v606_v48  ;;  %v751_v35 = vadd.f32 %v1530_v6, %v750_v49 }
  0xf1   : > { %v609_v52 = vpop.f32.mrb[7].mxu0  ;;  %v753_v53 = vpop.f32.mrb[7].mxu1  ;;  %v1568_v36 = vadd.f32 %v1264_v50, %v1530_v6  ;;  %v1571_v37 = vadd.f32 %v1300_v51, %v1530_v6 }
  0xf2   : > { %v610_v38 = vadd.f32 %v1530_v6, %v609_v52  ;;  %v754_v39 = vadd.f32 %v1530_v6, %v753_v53 }
  0xf6   : > { %v1267_v54 = vpop.f32.mrb[8].mxu0  ;;  %v1303_v55 = vpop.f32.mrb[8].mxu1 }
  0xf7   : > { %v622_v56 = vpop.f32.mrb[9].mxu0  ;;  %v766_v57 = vpop.f32.mrb[9].mxu1  ;;  %v1576_v40 = vadd.f32 %v1267_v54, %v1530_v6  ;;  %v1579_v44 = vadd.f32 %v1303_v55, %v1530_v6 }
  0xf8   : > { %v1503_v58 = vpop.f32.mrb[10].mxu0  ;;  %v1505_v59 = vpop.f32.mrb[10].mxu1  ;;  %v1582_v45 = vadd.f32 %v1530_v6, %v622_v56  ;;  %v1585_v46 = vadd.f32 %v1530_v6, %v766_v57 }
  0xf9   : > { %v1507_v60 = vpop.f32.mrb[11].mxu0  ;;  %v1509_v61 = vpop.f32.mrb[11].mxu1  ;;  %v1597_v56 = vadd.f32 %v1503_v58, %v1530_v6 }
  0xfe   : > { %v1511_v62 = vpop.f32.mrb[12].mxu0  ;;  %v1513_v63 = vpop.f32.mrb[12].mxu1 }
  0xff   : > { %v1515_v0 = vpop.f32.mrb[13].mxu0  ;;  %v1517_v1 = vpop.f32.mrb[13].mxu1 }
 0x100   : > { %v1519_v2 = vpop.f32.mrb[14].mxu0  ;;  %v1521_v3 = vpop.f32.mrb[14].mxu1 }
 0x101   : > { %v1523_v4 = vpop.f32.mrb[15].mxu0  ;;  %v1525_v5 = vpop.f32.mrb[15].mxu1 }
 0x106   : > { %v1275_v7 = vpop.f32.mrb[16].mxu0  ;;  %v1311_v10 = vpop.f32.mrb[16].mxu1 }
 0x107   : > { %v663_v9 = vadd.f32 %v1275_v7, %v1530_v6  ;;  %v1534_v11 = vpop.f32.mrb[17].mxu0  ;;  %v807_v13 = vadd.f32 %v1311_v10, %v1530_v6  ;;  %v1538_v14 = vpop.f32.mrb[17].mxu1 }
 0x108   : > { %v1276_v15 = vpop.f32.mrb[18].mxu0  ;;  %v1312_v20 = vpop.f32.mrb[18].mxu1 }
 0x109   : > { %v877_v18 = vmax.f32 %v591_v8, %v663_v9  ;;  %v666_v19 = vadd.f32 %v1276_v15, %v1530_v6  ;;  %v1545_v21 = vpop.f32.mrb[19].mxu0  ;;  %v895_v24 = vmax.f32 %v735_v12, %v807_v13  ;;  %v810_v25 = vadd.f32 %v1312_v20, %v1530_v6  ;;  %v1550_v26 = vpop.f32.mrb[19].mxu1 }
 0x10b   : > { %v878_v30 = vmax.f32 %v594_v17, %v666_v19  ;;  %v913_v33 = vmax.f32 %v877_v18, %v895_v24  ;;  %v896_v34 = vmax.f32 %v738_v23, %v810_v25  ;;  %v1609_v24 = vadd.f32 %v1505_v59, %v1530_v6 }
 0x10c   : > { %v626_v25 = vadd.f32 %v1530_v6, %v1507_v60  ;;  %v1625_v59 = vadd.f32 %v1513_v63, %v1530_v6 }
 0x10d   : > { %v931_v41 = vmax.f32 %v913_v33, 0.0  ;;  %v914_v42 = vmax.f32 %v878_v30, %v896_v34 }
 0x10e   : > { %v1279_v43 = vpop.f32.mrb[20].mxu0  ;;  %v1315_v48 = vpop.f32.mrb[20].mxu1 }
 0x10f   : > { %v679_v47 = vadd.f32 %v1279_v43, %v1530_v6  ;;  %v670_v49 = vpop.f32.mrb[21].mxu0  ;;  %v1197_v50 = vpack.c.bf16 %v931_v41, %v931_v41  ;;  %v932_v51 = vmax.f32 %v914_v42, 0.0  ;;  %v823_v52 = vadd.f32 %v1315_v48, %v1530_v6  ;;  %v814_v54 = vpop.f32.mrb[21].mxu1 }
 0x110   : > { %v671_v53 = vadd.f32 %v1530_v6, %v670_v49  ;;  %v1280_v55 = vpop.f32.mrb[22].mxu0  ;;  %v815_v7 = vadd.f32 %v1530_v6, %v814_v54  ;;  %v1316_v9 = vpop.f32.mrb[22].mxu1 }
 0x111   : > { %v881_v57 = vmax.f32 %v607_v32, %v679_v47  ;;  %v682_v8 = vadd.f32 %v1280_v55, %v1530_v6  ;;  %v673_v10 = vpop.f32.mrb[23].mxu0  ;;  %1022 = vst.msk [vmem:[%s1590_s27] sm:$0xf] %vm1021_vm1, %v1197_v50  ;;  %v1198_v12 = vpack.c.bf16 %v932_v51, %v932_v51  ;;  %v899_v13 = vmax.f32 %v751_v35, %v823_v52  ;;  %v817_v18 = vpop.f32.mrb[23].mxu1 }
 0x112   : > { %v879_v15 = vmax.f32 %v1541_v16, %v671_v53  ;;  %v826_v17 = vadd.f32 %v1316_v9, %v1530_v6  ;;  %v897_v19 = vmax.f32 %v743_v22, %v815_v7  ;;  %v674_v20 = vadd.f32 %v1530_v6, %v673_v10 }
 0x113   : > { %v882_v58 = vmax.f32 %v610_v38, %v682_v8  ;;  %v818_v23 = vadd.f32 %v1530_v6, %v817_v18  ;;  %1023 = vst.msk [vmem:[%s1590_s27 + $0x4] sm:$0xf] %vm1021_vm1, %v1198_v12  ;;  %v917_v30 = vmax.f32 %v881_v57, %v899_v13  ;;  %v770_v32 = vadd.f32 %v1530_v6, %v1509_v61 }
 0x114   : > { %v900_v16 = vmax.f32 %v754_v39, %v826_v17  ;;  %v915_v22 = vmax.f32 %v879_v15, %v897_v19  ;;  %v880_v33 = vmax.f32 %v1553_v27, %v674_v20  ;;  %v1621_v35 = vadd.f32 %v1511_v62, %v1530_v6 }
 0x115   : > { %v898_v34 = vmax.f32 %v1556_v28, %v818_v23  ;;  %v935_v60 = vmax.f32 %v917_v30, 0.0  ;;  %v1629_v39 = vadd.f32 %v1530_v6, %v1515_v0  ;;  %v783_v17 = vadd.f32 %v1530_v6, %v1517_v1 }
 0x116   : > { %v918_v38 = vmax.f32 %v882_v58, %v900_v16  ;;  %v1283_v41 = vpop.f32.mrb[24].mxu0  ;;  %v933_v61 = vmax.f32 %v915_v22, 0.0  ;;  %v1319_v28 = vpop.f32.mrb[24].mxu1  ;;  %v1653_v19 = vadd.f32 %v1519_v2, %v1530_v6  ;;  %v1660_v23 = vadd.f32 %v1521_v3, %v1530_v6 }
 0x117   : > { %v916_v42 = vmax.f32 %v880_v33, %v898_v34  ;;  %v695_v27 = vadd.f32 %v1283_v41, %v1530_v6  ;;  %v686_v43 = vpop.f32.mrb[25].mxu0  ;;  %v1201_v62 = vpack.c.bf16 %v935_v60, %v935_v60  ;;  %v839_v48 = vadd.f32 %v1319_v28, %v1530_v6  ;;  %v830_v49 = vpop.f32.mrb[25].mxu1 }
 0x118   : > { %v936_v47 = vmax.f32 %v918_v38, 0.0  ;;  %v687_v63 = vadd.f32 %v1530_v6, %v686_v43  ;;  %v1284_v50 = vpop.f32.mrb[26].mxu0  ;;  %v1199_v51 = vpack.c.bf16 %v933_v61, %v933_v61  ;;  %v831_v53 = vadd.f32 %v1530_v6, %v830_v49  ;;  %v1320_v54 = vpop.f32.mrb[26].mxu1 }
 0x119   : > { %v934_v52 = vmax.f32 %v916_v42, 0.0  ;;  %v885_v0 = vmax.f32 %v1582_v45, %v695_v27  ;;  %v689_v55 = vpop.f32.mrb[27].mxu0  ;;  %1026 = vst.msk [vmem:[%s1590_s27 + $0x10] sm:$0xf] %vm1021_vm1, %v1201_v62  ;;  %v903_v7 = vmax.f32 %v1585_v46, %v839_v48  ;;  %v698_v9 = vadd.f32 %v1284_v50, %v1530_v6  ;;  %v833_v10 = vpop.f32.mrb[27].mxu1 }
 0x11a   : > { %v1202_v57 = vpack.c.bf16 %v936_v47, %v936_v47  ;;  %v883_v8 = vmax.f32 %v1559_v29, %v687_v63  ;;  %1024 = vst.msk [vmem:[%s1590_s27 + $0x8] sm:$0xf] %vm1021_vm1, %v1199_v51  ;;  %v901_v45 = vmax.f32 %v1563_v31, %v831_v53  ;;  %v842_v13 = vadd.f32 %v1320_v54, %v1530_v6 }
 0x11b   : > { %v1200_v12 = vpack.c.bf16 %v934_v52, %v934_v52  ;;  %v690_v15 = vadd.f32 %v1530_v6, %v689_v55  ;;  %v921_v46 = vmax.f32 %v885_v0, %v903_v7  ;;  %v886_v18 = vmax.f32 %v626_v25, %v698_v9 }
 0x11c   : > { %1027 = vst.msk [vmem:[%s1590_s27 + $0x14] sm:$0xf] %vm1021_vm1, %v1202_v57  ;;  %v834_v29 = vadd.f32 %v1530_v6, %v833_v10  ;;  %v919_v31 = vmax.f32 %v883_v8, %v901_v45  ;;  %v904_v58 = vmax.f32 %v770_v32, %v842_v13  ;;  %v642_v1 = vadd.f32 %v1530_v6, %v1523_v4 }
 0x11d   : > { %1025 = vst.msk [vmem:[%s1590_s27 + $0xc] sm:$0xf] %vm1021_vm1, %v1200_v12  ;;  %v884_v20 = vmax.f32 %v1568_v36, %v690_v15  ;;  %v939_v25 = vmax.f32 %v921_v46, 0.0  ;;  %v786_v2 = vadd.f32 %v1530_v6, %v1525_v5  ;;  %v658_v9 = vadd.f32 %v1530_v6, %v1545_v21 }
 0x11e   : > { %v902_v30 = vmax.f32 %v1571_v37, %v834_v29  ;;  %v1287_v16 = vpop.f32.mrb[28].mxu0  ;;  %v937_v22 = vmax.f32 %v919_v31, 0.0  ;;  %v922_v33 = vmax.f32 %v886_v18, %v904_v58  ;;  %v1323_v36 = vpop.f32.mrb[28].mxu1 }
 0x11f   : > { %v711_v32 = vadd.f32 %v1287_v16, %v1530_v6  ;;  %v702_v34 = vpop.f32.mrb[29].mxu0  ;;  %v1205_v60 = vpack.c.bf16 %v939_v25, %v939_v25  ;;  %v855_v38 = vadd.f32 %v1323_v36, %v1530_v6  ;;  %v846_v41 = vpop.f32.mrb[29].mxu1 }
 0x120   : > { %v920_v3 = vmax.f32 %v884_v20, %v902_v30  ;;  %v703_v4 = vadd.f32 %v1530_v6, %v702_v34  ;;  %v1288_v37 = vpop.f32.mrb[30].mxu0  ;;  %v1203_v61 = vpack.c.bf16 %v937_v22, %v937_v22  ;;  %v940_v42 = vmax.f32 %v922_v33, 0.0  ;;  %v1324_v28 = vpop.f32.mrb[30].mxu1 }
 0x121   : > { %v889_v5 = vmax.f32 %v1629_v39, %v711_v32  ;;  %v847_v27 = vadd.f32 %v1530_v6, %v846_v41  ;;  %v705_v43 = vpop.f32.mrb[31].mxu0  ;;  %1030 = vst.msk [vmem:[%s1590_s27 + $0x20] sm:$0xf] %vm1021_vm1, %v1205_v60  ;;  %v907_v47 = vmax.f32 %v783_v17, %v855_v38  ;;  %v714_v63 = vadd.f32 %v1288_v37, %v1530_v6  ;;  %v849_v49 = vpop.f32.mrb[31].mxu1 }
 0x122   : > { %v938_v62 = vmax.f32 %v920_v3, 0.0  ;;  %v887_v48 = vmax.f32 %v1576_v40, %v703_v4  ;;  %1028 = vst.msk [vmem:[%s1590_s27 + $0x18] sm:$0xf] %vm1021_vm1, %v1203_v61  ;;  %v1206_v50 = vpack.c.bf16 %v940_v42, %v940_v42  ;;  %v858_v51 = vadd.f32 %v1324_v28, %v1530_v6 }
 0x123   : > { %v905_v39 = vmax.f32 %v1579_v44, %v847_v27  ;;  %v706_v52 = vadd.f32 %v1530_v6, %v705_v43  ;;  %v925_v53 = vmax.f32 %v889_v5, %v907_v47  ;;  %v890_v54 = vmax.f32 %v642_v1, %v714_v63 }
 0x124   : > { %v1204_v0 = vpack.c.bf16 %v938_v62, %v938_v62  ;;  %v850_v55 = vadd.f32 %v1530_v6, %v849_v49  ;;  %v655_v40 = vadd.f32 %v1530_v6, %v1534_v11  ;;  %1031 = vst.msk [vmem:[%s1590_s27 + $0x24] sm:$0xf] %vm1021_vm1, %v1206_v50  ;;  %v908_v7 = vmax.f32 %v786_v2, %v858_v51 }
 0x125   : > { %v923_v57 = vmax.f32 %v887_v48, %v905_v39  ;;  %v888_v8 = vmax.f32 %v1597_v56, %v706_v52  ;;  %v799_v44 = vadd.f32 %v1530_v6, %v1538_v14  ;;  %v943_v10 = vmax.f32 %v925_v53, 0.0 }
 0x126   : > { %1029 = vst.msk [vmem:[%s1590_s27 + $0x1c] sm:$0xf] %vm1021_vm1, %v1204_v0  ;;  %v906_v12 = vmax.f32 %v1609_v24, %v850_v55  ;;  %v1291_v45 = vpop.f32.mrb[32].mxu0  ;;  %v802_v11 = vadd.f32 %v1530_v6, %v1550_v26  ;;  %v926_v15 = vmax.f32 %v890_v54, %v908_v7  ;;  %v1327_v17 = vpop.f32.mrb[32].mxu1 }
 0x127   : > { %v941_v13 = vmax.f32 %v923_v57, 0.0  ;;  %v727_v56 = vadd.f32 %v1291_v45, %v1530_v6  ;;  %v718_v46 = vpop.f32.mrb[33].mxu0  ;;  %v1209_v14 = vpack.c.bf16 %v943_v10, %v943_v10  ;;  %v871_v21 = vadd.f32 %v1327_v17, %v1530_v6  ;;  %v862_v31 = vpop.f32.mrb[33].mxu1 }
 0x128   : > { %v924_v18 = vmax.f32 %v888_v8, %v906_v12  ;;  %v719_v29 = vadd.f32 %v1530_v6, %v718_v46  ;;  %v1292_v24 = vpop.f32.mrb[34].mxu0  ;;  %v944_v20 = vmax.f32 %v926_v15, 0.0  ;;  %v863_v26 = vadd.f32 %v1530_v6, %v862_v31  ;;  %v1328_v25 = vpop.f32.mrb[34].mxu1 }
 0x129   : > { %v1207_v58 = vpack.c.bf16 %v941_v13, %v941_v13  ;;  %v893_v1 = vmax.f32 %v655_v40, %v727_v56  ;;  %v721_v30 = vpop.f32.mrb[35].mxu0  ;;  %1034 = vst.msk [vmem:[%s1590_s27 + $0x30] sm:$0xf] %vm1021_vm1, %v1209_v14  ;;  %v911_v2 = vmax.f32 %v799_v44, %v871_v21  ;;  %v730_v33 = vadd.f32 %v1292_v24, %v1530_v6  ;;  %v865_v32 = vpop.f32.mrb[35].mxu1 }
 0x12a   : > { %v942_v16 = vmax.f32 %v924_v18, 0.0  ;;  %v891_v22 = vmax.f32 %v1621_v35, %v719_v29  ;;  %v1210_v36 = vpack.c.bf16 %v944_v20, %v944_v20  ;;  %v909_v34 = vmax.f32 %v1625_v59, %v863_v26 }
 0x12b   : > { %1032 = vst.msk [vmem:[%s1590_s27 + $0x28] sm:$0xf] %vm1021_vm1, %v1207_v58  ;;  %v874_v60 = vadd.f32 %v1328_v25, %v1530_v6  ;;  %v722_v3 = vadd.f32 %v1530_v6, %v721_v30  ;;  %v929_v4 = vmax.f32 %v893_v1, %v911_v2  ;;  %v894_v41 = vmax.f32 %v658_v9, %v730_v33 }
 0x12c   : > { %v1208_v38 = vpack.c.bf16 %v942_v16, %v942_v16  ;;  %v866_v37 = vadd.f32 %v1530_v6, %v865_v32  ;;  %1035 = vst.msk [vmem:[%s1590_s27 + $0x34] sm:$0xf] %vm1021_vm1, %v1210_v36  ;;  %v927_v35 = vmax.f32 %v891_v22, %v909_v34 }
 0x12d   : > { %v912_v61 = vmax.f32 %v802_v11, %v874_v60  ;;  %v892_v42 = vmax.f32 %v1653_v19, %v722_v3  ;;  %v947_v59 = vmax.f32 %v929_v4, 0.0 }
 0x12e   : > { %1033 = vst.msk [vmem:[%s1590_s27 + $0x2c] sm:$0xf] %vm1021_vm1, %v1208_v38  ;;  %v910_v5 = vmax.f32 %v1660_v23, %v866_v37  ;;  %v945_v27 = vmax.f32 %v927_v35, 0.0 }
 0x12f   : > { %v930_v28 = vmax.f32 %v894_v41, %v912_v61  ;;  %v1213_v43 = vpack.c.bf16 %v947_v59, %v947_v59 }
 0x130   : > { %v928_v62 = vmax.f32 %v892_v42, %v910_v5  ;;  %v1211_v47 = vpack.c.bf16 %v945_v27, %v945_v27 }
 0x131   : > { %v948_v6 = vmax.f32 %v930_v28, 0.0  ;;  %1038 = vst.msk [vmem:[%s1590_s27 + $0x40] sm:$0xf] %vm1021_vm1, %v1213_v43 }
 0x132   : > { %v946_v48 = vmax.f32 %v928_v62, 0.0  ;;  %1036 = vst.msk [vmem:[%s1590_s27 + $0x38] sm:$0xf] %vm1021_vm1, %v1211_v47 }
 0x133   : > { %v1214_v63 = vpack.c.bf16 %v948_v6, %v948_v6 }
 0x134   : > { %v1212_v49 = vpack.c.bf16 %v946_v48, %v946_v48 }
 0x135   : > { %1039 = vst.msk [vmem:[%s1590_s27 + $0x44] sm:$0xf] %vm1021_vm1, %v1214_v63 }
 0x136   : > { %1037 = vst.msk [vmem:[%s1590_s27 + $0x3c] sm:$0xf] %vm1021_vm1, %v1212_v49 }
 0x137 PF: > { %s13_s12 = sadd.s32 1, %s1387_s12  }
 0x138   : > { %p10_p4 = scmp.ge.s32.totalorder %s13_s12, 4  }
 0x13a   :  { %12 = sbr.rel (!%p10_p4) target bundleno = 1 (0x1), region = 62 }

// kernel: _lambda_.3
= control target key start
LH: loop header
LB: loop body
LE: loop exit
PB: predicated region body
PF: predicated region fallthrough
CT: control target
= control target key end

     0   :  { %14 = vsyncpa [#allocation3], 0  ;;  %s3117_s0 = inlined_call_operand.vmem [shape: bf16[2,64,400], index: 0, kind: input, shape index: {}]   ;;  %s3118_s1 = inlined_call_operand.vmem [shape: bf16[400,32], index: 1, kind: input, shape index: {}]   ;;  %s3119_s2 = inlined_call_operand.vmem [shape: f32[1,32], index: 2, kind: input, shape index: {}]   ;;  %s3120_s3 = inlined_call_operand.vmem [shape: bf16[16,32,64], index: 3, kind: input, shape index: {}]   ;;  %s3121_s4 = inlined_call_operand.vmem [shape: f32[1,64], index: 4, kind: input, shape index: {}]   ;;  %s3122_s5 = inlined_call_operand.vmem [shape: bf16[64,16], index: 5, kind: input, shape index: {}]   ;;  %s3123_s6 = inlined_call_operand.vmem [shape: f32[1,16], index: 6, kind: input, shape index: {}]   ;;  %s3124_s7 = inlined_call_operand.hbm [shape: f32[2,1,16], index: 7, kind: output, shape index: {0}]   ;;  %s3125_s8 = inlined_call_operand.hbm [shape: f32[2,1,64], index: 8, kind: output, shape index: {1}]  }
   0x1   :  { %16 = vsyncpa [#allocation3 + $0x1], 0 }
   0x2   :  { %17 = vsyncpa [#allocation5], 0 }
   0x3   :  { %19 = vsyncpa [#allocation5 + $0x1], 0  ;;  %s2652_s27 = smov 0   ;;  %s2654_s28 = smov 0  }
   0x4   :  { %s2656_s29 = smov 0   ;;  %s2658_s30 = smov 0  }
   0x5 LB: > { %s2673_s9 = sadd.s32 4294967295, %s2600_s30   ;;  %s1967_s10 = sadd.s32 4294967294, %s2600_s30   ;;  %s2600_s30 = sphi %s2658_s30, %s3131_s30   ;;  %s2596_s29 = sphi %s2656_s29, %s3130_s29   ;;  %s2592_s28 = sphi %s2654_s28, %s3129_s28   ;;  %s2588_s27 = sphi %s2652_s27, %s3128_s27  }
   0x6   : > { %s2677_s11 = sadd.s32 1, %s2600_s30   ;;  %s184_s12 = sadd.s32 1, %s2596_s29 }
   0x7   : > { %s181_s13 = ssub.s32 %s2600_s30, %s2677_s11  ;;  %p194_p0 = scmp.ne.s32.totalorder %s2596_s29, %s2592_s28 }
   0x8   : > { %p182_p1 = scmp.eq.s32.totalorder %s181_s13, 0  ;;  %p195_p2 = scmp.eq.s32.totalorder %s2673_s9, 1 }
   0x9   : > { %p200_p3 = scmp.ne.s32.totalorder %s2592_s28, %s2588_s27  ;;  %p201_p4 = scmp.eq.s32.totalorder %s1967_s10, 1 }
   0xa   : > { %s2688_s14 = scalar_select %p182_p1, %s2596_s29, %s184_s12  }
   0xb   : > { %p2690_p5 = por %p195_p2, %p194_p0  ;;  %p2694_p6 = por %p201_p4, %p200_p3 }
   0xc   : > { %p1970_p7 = scmp.ge.s32.totalorder %s2600_s30, 1  ;;  %p271_p8 = scmp.lt.s32.totalorder %s2600_s30, 3 }
   0xe   : > { %p272_p9 = pnand %p1970_p7, %p271_p8 }
   0xf   : > { %v2417_v0 = vld [vmem:[%s3118_s1 + $0x40] sm:$0xff] (!%p272_p9)   ;;  %v2602_v1 = vmov (!%p272_p9), 0   ;;  %v2420_v4 = vld [vmem:[%s3118_s1 + $0x48] sm:$0xff] (!%p272_p9)   ;;  %v2423_v7 = vld [vmem:[%s3118_s1 + $0x50] sm:$0xff] (!%p272_p9)   ;;  %p308_p10 = scmp.lt.s32.totalorder (!%p272_p9), %s2673_s9, 1  ;;  %vm613_vm0 = vcmask (!%p272_p9), 130048  }
  0x10   : > { %275 = sbr.rel (%p272_p9) target bundleno = 1134 (0x46e), region = 48  ;;  %691 = vmatprep.subr.bf16.mxu1 (!%p272_p9), %v2602_v1  ;;  %v2418_v2 = vld [vmem:[%s3118_s1 + $0x80] sm:$0xff] (!%p272_p9)   ;;  %2137 = vmatprep.subr.bf16.mxu0 (!%p272_p9), %v2417_v0  ;;  %v2421_v5 = vld [vmem:[%s3118_s1 + $0x88] sm:$0xff] (!%p272_p9)   ;;  %v2424_v8 = vld [vmem:[%s3118_s1 + $0x90] sm:$0xff] (!%p272_p9)   ;;  %v2603_v43 = vmov (!%p272_p9), 0.0   ;;  %vm2604_vm1 = vmmov (!%p272_p9), 0  }
  0x11   : > { %v2419_v3 = vld [vmem:[%s3118_s1] sm:$0xff] (!%p272_p9)   ;;  %692 = vmatpush1.bf16.msra.mxu1 (!%p272_p9), %v2418_v2  ;;  %v2422_v6 = vld [vmem:[%s3118_s1 + $0x8] sm:$0xff] (!%p272_p9)   ;;  %v2425_v9 = vld [vmem:[%s3118_s1 + $0x10] sm:$0xff] (!%p272_p9)   ;;  %vm789_vm2 = vcmask (!%p272_p9), 261120   ;;  %s3033_s18 = sand.u32 (!%p272_p9), 1, %s2592_s28   ;;  %vm1759_vm3 = vcmask (!%p272_p9), 516096  }
  0x12   : > { %2138 = vmatpush3.bf16.msra.mxu0 (!%p272_p9), %v2419_v3  ;;  %693 = vmatprep.subr.bf16.mxu1 (!%p272_p9), %v2602_v1  ;;  %v2426_v10 = vld [vmem:[%s3118_s1 + $0x58] sm:$0xff] (!%p272_p9)   ;;  %v2429_v13 = vld [vmem:[%s3118_s1 + $0x60] sm:$0xff] (!%p272_p9)   ;;  %v2432_v16 = vld [vmem:[%s3118_s1 + $0x68] sm:$0xff] (!%p272_p9)   ;;  %vm1795_vm4 = vcmask (!%p272_p9), 523264   ;;  %s307_s20 = scalar_lea.vmem (!%p272_p9), [#allocation4], %s3033_s18  ;;  %vm1839_vm5 = vcmask (!%p272_p9), 122880  }
  0x13   : > { %2139 = vmatprep.subr.bf16.mxu0 (!%p272_p9), %v2420_v4  ;;  %v2427_v11 = vld [vmem:[%s3118_s1 + $0x98] sm:$0xff] (!%p272_p9)   ;;  %v2430_v14 = vld [vmem:[%s3118_s1 + $0xa0] sm:$0xff] (!%p272_p9)   ;;  %v2433_v17 = vld [vmem:[%s3118_s1 + $0xa8] sm:$0xff] (!%p272_p9)   ;;  %s2132_s23 = sshll.u32 (!%p272_p9), %s2673_s9, 4  ;;  %s1884_s10 = sshll.u32 (!%p272_p9), %s307_s20, 4  ;;  %s1885_s10 = int_to_ptr.vmem [resolvable:$true] %s1884_s10 }
  0x14   : > { %v2428_v12 = vld [vmem:[%s3118_s1 + $0x18] sm:$0xff] (!%p272_p9)   ;;  %v2431_v15 = vld [vmem:[%s3118_s1 + $0x20] sm:$0xff] (!%p272_p9)   ;;  %v2434_v18 = vld [vmem:[%s3118_s1 + $0x28] sm:$0xff] (!%p272_p9)   ;;  %s3047_s25 = scalar_lea.hbm (!%p272_p9), %s3125_s8, %s2132_s23  ;;  %s2506_s12 = scalar_lea.vmem (!%p272_p9), %s1885_s10, 16 }
  0x15   : > { %694 = vmatpush1.bf16.msra.mxu1 (!%p272_p9), %v2421_v5  ;;  %v2435_v19 = vld [vmem:[%s3118_s1 + $0x70] sm:$0xff] (!%p272_p9)   ;;  %v2438_v22 = vld [vmem:[%s3118_s1 + $0x78] sm:$0xff] (!%p272_p9)   ;;  %v2444_v28 = vld [vmem:[%s3118_s1 + $0xc0] sm:$0xff] (!%p272_p9)   ;;  %p2507_p11 = scmp.ne.s32.totalorder (!%p272_p9), %s1885_s10, %s2506_s12  ;;  %s2605_s13 = smov (!%p272_p9), [#allocation4]  }
  0x16   : > { %2140 = vmatpush3.bf16.msra.mxu0 (!%p272_p9), %v2422_v6  ;;  %695 = vmatprep.subr.bf16.mxu1 (!%p272_p9), %v2602_v1  ;;  %v2436_v20 = vld [vmem:[%s3118_s1 + $0xb0] sm:$0xff] (!%p272_p9)   ;;  %v2439_v24 = vld [vmem:[%s3118_s1 + $0xb8] sm:$0xff] (!%p272_p9)   ;;  %v2467_v44 = vld [vmem:[%s3120_s3 + $0x20] sm:$0xff] (!%p272_p9)   ;;  %s2510_s17 = sshll.u32 (!%p272_p9), %s2605_s13, 4  ;;  %s2511_s17 = int_to_ptr.vmem [resolvable:$false] %s2510_s17 }
  0x17   : > { %2141 = vmatprep.subr.bf16.mxu0 %v2423_v7  ;;  %s309_s19 = scalar_select %p308_p10, %s2673_s9, 1  ;;  %v2437_v21 = vld [vmem:[%s3118_s1 + $0x30] sm:$0xff]   ;;  %v2440_v26 = vld [vmem:[%s3118_s1 + $0x38] sm:$0xff]   ;;  %v2469_v46 = vld [vmem:[%s3120_s3 + $0x28] sm:$0xff]  }
  0x18   : > { %v2466_v42 = vld [vmem:[%s3120_s3 + $0x10] sm:$0xff]   ;;  %v2468_v45 = vld [vmem:[%s3120_s3 + $0x18] sm:$0xff]   ;;  %v1973_v49 = vld [vmem:[%s3119_s2] ss:$0 sm:$0xff]  ;;  %p2508_p12 = pnand %p2507_p11, %p2690_p5  ;;  %s2512_s21 = scalar_lea.vmem %s2511_s17, 32 }
  0x19   : > { %696 = vmatpush1.bf16.msra.mxu1 %v2424_v8  ;;  %s2136_s26 = sshll.u32 %s309_s19, 7  ;;  %p2513_p0 = scmp.lt.s32.totalorder %s1885_s10, %s2511_s17 }
  0x1a   : > { %2142 = vmatpush3.bf16.msra.mxu0 %v2425_v9  ;;  %697 = vmatprep.subr.bf16.mxu1 %v2602_v1  ;;  %s2771_s19 = scalar_lea.vmem %s3117_s0, %s2136_s26  ;;  %s1859_s26 = scalar_lea.sflag [#allocation5], %s3033_s18 }
  0x1b   : > { %2143 = vmatprep.subr.bf16.mxu0 %v2426_v10  ;;  %v2443_v23 = vld [vmem:[%s2771_s19 + $0x4] ss:$16 sps:$4 sm:$0xff]   ;;  %v2447_v25 = vld [vmem:[%s2771_s19 + $0xc] ss:$16 sps:$4 sm:$0xff]   ;;  %v2441_v27 = vld [vmem:[%s2771_s19] ss:$16 sps:$4 sm:$0xff]   ;;  %p2509_p13 = pneg %p2508_p12  ;;  %p2514_p1 = scmp.lt.s32.totalorder %s2512_s21, %s2506_s12 }
  0x1c   : > { %658 = vmatprep.mubr.bf16.mxu0 %v2443_v23  ;;  %2015 = vmatprep.mubr.msk.bf16.mxu1 %vm613_vm0, %v2447_v25  ;;  %v2448_v29 = vld [vmem:[%s2771_s19 + $0x24] ss:$16 sps:$4 sm:$0xff]   ;;  %v2445_v30 = vld [vmem:[%s2771_s19 + $0x8] ss:$16 sps:$4 sm:$0xff]   ;;  %v2451_v31 = vld [vmem:[%s2771_s19 + $0x2c] ss:$16 sps:$4 sm:$0xff]  }
  0x1d   : > { %698 = vmatpush1.bf16.msra.mxu1 %v2427_v11  ;;  %v2450_v32 = vld [vmem:[%s2771_s19 + $0x20] ss:$16 sps:$4 sm:$0xff]   ;;  %v2454_v33 = vld [vmem:[%s2771_s19 + $0x44] ss:$16 sps:$4 sm:$0xff]   ;;  %v2453_v34 = vld [vmem:[%s2771_s19 + $0x28] ss:$16 sps:$4 sm:$0xff]   ;;  %p2515_p2 = por %p2514_p1, %p2513_p0 }
  0x1e   : > { %2144 = vmatpush3.bf16.msra.mxu0 %v2428_v12  ;;  %699 = vmatprep.subr.bf16.mxu1 %v2602_v1  ;;  %v2457_v35 = vld [vmem:[%s2771_s19 + $0x4c] ss:$16 sps:$4 sm:$0xff]   ;;  %v2456_v36 = vld [vmem:[%s2771_s19 + $0x40] ss:$16 sps:$4 sm:$0xff]   ;;  %v2460_v37 = vld [vmem:[%s2771_s19 + $0x64] ss:$16 sps:$4 sm:$0xff]  }
  0x1f   : > { %2145 = vmatprep.subr.bf16.mxu0 %v2429_v13  ;;  %v2459_v38 = vld [vmem:[%s2771_s19 + $0x48] ss:$16 sps:$4 sm:$0xff]   ;;  %v2463_v39 = vld [vmem:[%s2771_s19 + $0x6c] ss:$16 sps:$4 sm:$0xff]   ;;  %v2462_v40 = vld [vmem:[%s2771_s19 + $0x60] ss:$16 sps:$4 sm:$0xff]   ;;  %p2516_p3 = pnand %p2515_p2, %p2509_p13 }
  0x20   : > { %v2465_v41 = vld [vmem:[%s2771_s19 + $0x68] ss:$16 sps:$4 sm:$0xff]  }
  0x21   : > { %700 = vmatpush1.bf16.msra.mxu1 %v2430_v14 }
  0x22   : > { %2146 = vmatpush3.bf16.msra.mxu0 %v2431_v15  ;;  %701 = vmatprep.subr.bf16.mxu1 %v2602_v1 }
  0x23   : > { %2147 = vmatprep.subr.bf16.mxu0 %v2432_v16 }
  0x25   : > { %702 = vmatpush1.bf16.msra.mxu1 %v2433_v17 }
  0x26   : > { %2148 = vmatpush3.bf16.msra.mxu0 %v2434_v18  ;;  %703 = vmatprep.subr.bf16.mxu1 %v2602_v1 }
  0x27   : > { %2149 = vmatprep.subr.bf16.mxu0 %v2435_v19 }
  0x29   : > { %704 = vmatpush1.bf16.msra.mxu1 %v2436_v20 }
  0x2a   : > { %2150 = vmatpush3.bf16.msra.mxu0 %v2437_v21  ;;  %705 = vmatprep.subr.bf16.mxu1 %v2602_v1 }
  0x2b   : > { %2151 = vmatprep.subr.bf16.mxu0 %v2438_v22 }
  0x2d   : > { %706 = vmatpush1.bf16.msra.mxu1 %v2439_v24 }
  0x2e   : > { %2152 = vmatpush3.bf16.msra.mxu0 %v2440_v26  ;;  %707 = vmatprep.subr.bf16.mxu1 %v2602_v1 }
  0x2f   : > { %2246 = vmatprep.subr.bf16.mxu0 %v2603_v43 }
  0x31   : > { %659 = vmatmul.mubr.bf16.vlgmr.msra.gmra.mrb[0].mxu0 %v2441_v27  ;;  %708 = vmatpush1.bf16.msra.mxu1 %v2444_v28 }
  0x32   : > { %666 = vmatprep.mubr.bf16.mxu0 %v2448_v29  ;;  %2230 = vmatprep.subr.bf16.mxu1 %v2603_v43 }
  0x33   : > { %2247 = vmatpush3.bf16.msra.mxu0 %v2467_v44 }
  0x34   : > { %724 = vmatmul.mubr.bf16.vlgmr.msra.gmra.mrb[0].mxu1 %v2445_v30  ;;  %2248 = vmatprep.subr.bf16.mxu0 %v2603_v43 }
  0x35   : > { %2016 = vmatprep.mubr.msk.bf16.mxu1 %vm613_vm0, %v2451_v31  ;;  %2231 = vmatpush3.bf16.msra.mxu1 %v2466_v42 }
  0x36   : > { %2232 = vmatprep.subr.bf16.mxu1 %v2603_v43 }
  0x37   : > { %2249 = vmatpush3.bf16.msra.mxu0 %v2469_v46 }
  0x38   : > { %2262 = vmatprep.subr.bf16.mxu0 %v2603_v43 }
  0x39   : > { %667 = vmatmul.mubr.bf16.gmra.mrb[4].mxu0 %v2450_v32  ;;  %2233 = vmatpush3.bf16.msra.mxu1 %v2468_v45 }
  0x3a   : > { %674 = vmatprep.mubr.bf16.mxu0 %v2454_v33  ;;  %2238 = vmatprep.subr.bf16.mxu1 %v2603_v43 }
  0x3c   : > { %732 = vmatmul.mubr.bf16.gmra.mrb[4].mxu1 %v2453_v34 }
  0x3d   : > { %2017 = vmatprep.mubr.msk.bf16.mxu1 %vm613_vm0, %v2457_v35 }
  0x41   : > { %675 = vmatmul.mubr.bf16.gmra.mrb[8].mxu0 %v2456_v36 }
  0x42   : > { %682 = vmatprep.mubr.bf16.mxu0 %v2460_v37 }
  0x44   : > { %740 = vmatmul.mubr.bf16.gmra.mrb[8].mxu1 %v2459_v38 }
  0x45   : > { %2018 = vmatprep.mubr.msk.bf16.mxu1 %vm613_vm0, %v2463_v39 }
  0x49   : > { %683 = vmatmul.mubr.bf16.gmra.mrb[12].mxu0 %v2462_v40 }
  0x4a   : > { %2250 = vmatprep.mubr.msk.bf16.mxu0 %vm2604_vm1, %v2603_v43 }
  0x4c   : > { %748 = vmatmul.mubr.bf16.gmra.mrb[12].mxu1 %v2465_v41 }
  0x4d   : > { %2234 = vmatprep.mubr.msk.bf16.mxu1 %vm2604_vm1, %v2603_v43 }
 0x104   : > { %v2153_v47 = vpop.f32.mrb[0].mxu0 }
 0x105   : > { %v2154_v48 = vpop.f32.mrb[1].mxu0 }
 0x106   : > { %v2155_v50 = vadd.f32 %v2154_v48, %v2153_v47  ;;  %v2156_v51 = vpop.f32.mrb[2].mxu0 }
 0x107   : > { %v2157_v52 = vpop.f32.mrb[3].mxu0  ;;  %v725_v53 = vpop.f32.mrb[0].mxu1 }
 0x108   : > { %v2158_v54 = vadd.f32 %v2157_v52, %v2156_v51  ;;  %v661_v55 = vadd.f32 %v2155_v50, %v1973_v49  ;;  %v727_v56 = vpop.f32.mrb[1].mxu1  ;;  %v2470_v51 = vld [vmem:[%s3120_s3] sm:$0xff]  }
 0x109   : > { %v728_v57 = vpop.f32.mrb[2].mxu1  ;;  %v2471_v52 = vld [vmem:[%s3120_s3 + $0x40] sm:$0xff]   ;;  %v2474_v56 = vld [vmem:[%s3120_s3 + $0x30] sm:$0xff]  }
 0x10a   : > { %v726_v58 = vadd.f32 %v725_v53, %v661_v55  ;;  %v664_v59 = vadd.f32 %v2158_v54, %v1973_v49  ;;  %v730_v60 = vpop.f32.mrb[3].mxu1  ;;  %v2472_v54 = vld [vmem:[%s3120_s3 + $0x8] sm:$0xff]  }
 0x10b   : > { %v2473_v55 = vld [vmem:[%s3120_s3 + $0x48] sm:$0xff]  }
 0x10c   : > { %v729_v61 = vadd.f32 %v728_v57, %v664_v59  ;;  %v2159_v62 = vpop.f32.mrb[4].mxu0  ;;  %v2475_v57 = vld [vmem:[%s3120_s3 + $0x60] sm:$0xff]   ;;  %v2476_v59 = vld [vmem:[%s3120_s3 + $0x38] sm:$0xff]   ;;  %v2477_v60 = vld [vmem:[%s3120_s3 + $0x68] sm:$0xff]  }
 0x10d   : > { %v2160_v63 = vpop.f32.mrb[5].mxu0 }
 0x10e   : > { %v2161_v0 = vadd.f32 %v2160_v63, %v2159_v62  ;;  %v2162_v1 = vpop.f32.mrb[6].mxu0  ;;  %v2479_v62 = vld [vmem:[%s3120_s3 + $0x80] sm:$0xff]  }
 0x10f   : > { %v2163_v2 = vpop.f32.mrb[7].mxu0  ;;  %v733_v3 = vpop.f32.mrb[4].mxu1 }
 0x110   : > { %v2164_v4 = vadd.f32 %v2163_v2, %v2162_v1  ;;  %v669_v5 = vadd.f32 %v2161_v0, %v1973_v49  ;;  %v735_v6 = vpop.f32.mrb[5].mxu1  ;;  %v2480_v1 = vld [vmem:[%s3120_s3 + $0x58] sm:$0xff]   ;;  %v2481_v2 = vld [vmem:[%s3120_s3 + $0x88] sm:$0xff]  }
 0x111   : > { %v736_v7 = vpop.f32.mrb[6].mxu1 }
 0x112   : > { %v734_v8 = vadd.f32 %v733_v3, %v669_v5  ;;  %v672_v9 = vadd.f32 %v2164_v4, %v1973_v49  ;;  %v738_v10 = vpop.f32.mrb[7].mxu1  ;;  %v2482_v3 = vld [vmem:[%s3120_s3 + $0x70] sm:$0xff]   ;;  %v2483_v4 = vld [vmem:[%s3120_s3 + $0xa0] sm:$0xff]  }
 0x113   : > { %v2487_v10 = vld [vmem:[%s3120_s3 + $0xc0] sm:$0xff]  }
 0x114   : > { %v756_v11 = vmax.f32 %v726_v58, %v734_v8  ;;  %v737_v12 = vadd.f32 %v736_v7, %v672_v9  ;;  %v2165_v13 = vpop.f32.mrb[8].mxu0  ;;  %v2484_v7 = vld [vmem:[%s3120_s3 + $0x78] sm:$0xff]   ;;  %v2485_v8 = vld [vmem:[%s3120_s3 + $0xa8] sm:$0xff]   ;;  %v2486_v9 = vld [vmem:[%s3120_s3 + $0x90] sm:$0xff]  }
 0x115   : > { %v2166_v14 = vpop.f32.mrb[9].mxu0 }
 0x116   : > { %v757_v15 = vmax.f32 %v729_v61, %v737_v12  ;;  %v2167_v16 = vadd.f32 %v2166_v14, %v2165_v13  ;;  %v2168_v17 = vpop.f32.mrb[10].mxu0  ;;  %v2478_v61 = vld [vmem:[%s3120_s3 + $0x50] sm:$0xff]   ;;  %v2488_v13 = vld [vmem:[%s3120_s3 + $0x98] sm:$0xff]   ;;  %v2489_v14 = vld [vmem:[%s3120_s3 + $0xc8] sm:$0xff]  }
 0x117   : > { %v2169_v18 = vpop.f32.mrb[11].mxu0  ;;  %v741_v19 = vpop.f32.mrb[8].mxu1 }
 0x118   : > { %v2170_v20 = vadd.f32 %v2169_v18, %v2168_v17  ;;  %v677_v21 = vadd.f32 %v2167_v16, %v1973_v49  ;;  %v743_v22 = vpop.f32.mrb[9].mxu1  ;;  %v2491_v16 = vld [vmem:[%s3120_s3 + $0xe0] sm:$0xff]  }
 0x119   : > { %v744_v23 = vpop.f32.mrb[10].mxu1 }
 0x11a   : > { %v742_v24 = vadd.f32 %v741_v19, %v677_v21  ;;  %v680_v25 = vadd.f32 %v2170_v20, %v1973_v49  ;;  %v746_v26 = vpop.f32.mrb[11].mxu1  ;;  %v2492_v19 = vld [vmem:[%s3120_s3 + $0xb8] sm:$0xff]   ;;  %v2493_v20 = vld [vmem:[%s3120_s3 + $0xe8] sm:$0xff]   ;;  %v2494_v21 = vld [vmem:[%s3120_s3 + $0xd0] sm:$0xff]  }
 0x11c   : > { %v745_v27 = vadd.f32 %v744_v23, %v680_v25  ;;  %v2171_v28 = vpop.f32.mrb[12].mxu0  ;;  %v2496_v25 = vld [vmem:[%s3120_s3 + $0xf0] sm:$0xff]  }
 0x11d   : > { %v2172_v29 = vpop.f32.mrb[13].mxu0 }
 0x11e   : > { %v2173_v30 = vadd.f32 %v2172_v29, %v2171_v28  ;;  %v2174_v31 = vpop.f32.mrb[14].mxu0  ;;  %v2498_v29 = vld [vmem:[%s3122_s5] sm:$0xff]  }
 0x11f   : > { %v2175_v32 = vpop.f32.mrb[15].mxu0  ;;  %v749_v33 = vpop.f32.mrb[12].mxu1 }
 0x120   : > { %v2176_v34 = vadd.f32 %v2175_v32, %v2174_v31  ;;  %v685_v35 = vadd.f32 %v2173_v30, %v1973_v49  ;;  %v751_v36 = vpop.f32.mrb[13].mxu1  ;;  %v2499_v30 = vld [vmem:[%s3122_s5 + $0x8] sm:$0xff]   ;;  %v2500_v31 = vld [vmem:[%s3122_s5 + $0x10] sm:$0xff]   ;;  %v2501_v32 = vld [vmem:[%s3122_s5 + $0x18] sm:$0xff]  }
 0x121   : > { %v752_v37 = vpop.f32.mrb[14].mxu1 }
 0x122   : > { %v750_v38 = vadd.f32 %v749_v33, %v685_v35  ;;  %v688_v39 = vadd.f32 %v2176_v34, %v1973_v49  ;;  %v754_v40 = vpop.f32.mrb[15].mxu1 }
 0x124   : > { %v758_v41 = vmax.f32 %v742_v24, %v750_v38  ;;  %v753_v42 = vadd.f32 %v752_v37, %v688_v39  ;;  %v2495_v24 = vld [vmem:[%s3120_s3 + $0xd8] sm:$0xff]  }
 0x126   : > { %v760_v44 = vmax.f32 %v756_v11, %v758_v41  ;;  %v759_v45 = vmax.f32 %v745_v27, %v753_v42  ;;  %v2497_v27 = vld [vmem:[%s3120_s3 + $0xf8] sm:$0xff]  }
 0x128   : > { %v761_v46 = vmax.f32 %v757_v15, %v759_v45  ;;  %v762_v47 = vmax.f32 %v760_v44, 0.0  ;;  %v2490_v15 = vld [vmem:[%s3120_s3 + $0xb0] sm:$0xff]  }
 0x12a   : > { %v763_v48 = vmax.f32 %v761_v46, 0.0 }
 0x12c   : > { %v2836_v50 = vpack.c.bf16 %v763_v48, %v762_v47 }
 0x12e   : > { %v2845_v49 = vshrl.u32 %v2836_v50, 16  ;;  %v893_v53 = vrot.slane %v2836_v50, 1  ;;  %v1017_v58 = vrot.slane %v2836_v50, 2  ;;  %v1141_v0 = vrot.slane %v2836_v50, 3 }
 0x12f   : > { %v1265_v6 = vrot.slane %v2836_v50, 4  ;;  %v1389_v12 = vrot.slane %v2836_v50, 5  ;;  %v1513_v18 = vrot.slane %v2836_v50, 6  ;;  %v1637_v23 = vrot.slane %v2836_v50, 7 }
 0x130   : > { %2235 = vmatmul.mubr.msk.bf16.vlgmr.msra.gmra.mrb[16].mxu1 %vm789_vm2, %v2845_v49  ;;  %2251 = vmatmul.mubr.msk.bf16.vlgmr.msra.gmra.mrb[16].mxu0 %vm789_vm2, %v893_v53  ;;  %v955_v63 = vrot.slane %v2845_v49, 1  ;;  %v1079_v5 = vrot.slane %v2845_v49, 2  ;;  %v1203_v11 = vrot.slane %v2845_v49, 3  ;;  %v1327_v17 = vrot.slane %v2845_v49, 4 }
 0x131   : > { %2239 = vmatpush3.bf16.msra.mxu1 %v2470_v51  ;;  %2263 = vmatpush3.bf16.msra.mxu0 %v2471_v52  ;;  %v1451_v22 = vrot.slane %v2845_v49, 5  ;;  %v1575_v26 = vrot.slane %v2845_v49, 6  ;;  %v1699_v28 = vrot.slane %v2845_v49, 7 }
 0x132   : > { %2240 = vmatprep.subr.bf16.mxu1 %v2603_v43  ;;  %2264 = vmatprep.subr.bf16.mxu0 %v2603_v43 }
 0x133   : > { %2242 = vmatprep.mubr.msk.bf16.mxu1 %vm2604_vm1, %v2603_v43  ;;  %2266 = vmatprep.mubr.msk.bf16.mxu0 %vm2604_vm1, %v2603_v43 }
 0x135   : > { %2241 = vmatpush3.bf16.msra.mxu1 %v2472_v54  ;;  %2265 = vmatpush3.bf16.msra.mxu0 %v2473_v55 }
 0x136   : > { %2254 = vmatprep.subr.bf16.mxu1 %v2603_v43  ;;  %2278 = vmatprep.subr.bf16.mxu0 %v2603_v43 }
 0x138   : > { %2243 = vmatmul.mubr.msk.bf16.vlgmr.msra.gmra.mrb[20].mxu1 %vm789_vm2, %v2836_v50  ;;  %2267 = vmatmul.mubr.msk.bf16.vlgmr.msra.gmra.mrb[20].mxu0 %vm789_vm2, %v1017_v58 }
 0x139   : > { %2255 = vmatpush3.bf16.msra.mxu1 %v2474_v56  ;;  %2279 = vmatpush3.bf16.msra.mxu0 %v2475_v57 }
 0x13a   : > { %2256 = vmatprep.subr.bf16.mxu1 %v2603_v43  ;;  %2280 = vmatprep.subr.bf16.mxu0 %v2603_v43 }
 0x13b   : > { %2258 = vmatprep.mubr.msk.bf16.mxu1 %vm2604_vm1, %v2603_v43  ;;  %2282 = vmatprep.mubr.msk.bf16.mxu0 %vm2604_vm1, %v2603_v43 }
 0x13d   : > { %2257 = vmatpush3.bf16.msra.mxu1 %v2476_v59  ;;  %2281 = vmatpush3.bf16.msra.mxu0 %v2477_v60 }
 0x13e   : > { %2270 = vmatprep.subr.bf16.mxu1 %v2603_v43  ;;  %2294 = vmatprep.subr.bf16.mxu0 %v2603_v43 }
 0x140   : > { %2259 = vmatmul.mubr.msk.bf16.vlgmr.msra.gmra.mrb[24].mxu1 %vm789_vm2, %v955_v63  ;;  %2283 = vmatmul.mubr.msk.bf16.vlgmr.msra.gmra.mrb[24].mxu0 %vm789_vm2, %v1141_v0 }
 0x141   : > { %2271 = vmatpush3.bf16.msra.mxu1 %v2478_v61  ;;  %2295 = vmatpush3.bf16.msra.mxu0 %v2479_v62 }
 0x142   : > { %2272 = vmatprep.subr.bf16.mxu1 %v2603_v43  ;;  %2296 = vmatprep.subr.bf16.mxu0 %v2603_v43 }
 0x143   : > { %2274 = vmatprep.mubr.msk.bf16.mxu1 %vm2604_vm1, %v2603_v43  ;;  %2298 = vmatprep.mubr.msk.bf16.mxu0 %vm2604_vm1, %v2603_v43 }
 0x145   : > { %2273 = vmatpush3.bf16.msra.mxu1 %v2480_v1  ;;  %2297 = vmatpush3.bf16.msra.mxu0 %v2481_v2 }
 0x146   : > { %2286 = vmatprep.subr.bf16.mxu1 %v2603_v43  ;;  %2310 = vmatprep.subr.bf16.mxu0 %v2603_v43 }
 0x148   : > { %2275 = vmatmul.mubr.msk.bf16.vlgmr.msra.gmra.mrb[28].mxu1 %vm789_vm2, %v1079_v5  ;;  %2299 = vmatmul.mubr.msk.bf16.vlgmr.msra.gmra.mrb[28].mxu0 %vm789_vm2, %v1265_v6 }
 0x149   : > { %2287 = vmatpush3.bf16.msra.mxu1 %v2482_v3  ;;  %2311 = vmatpush3.bf16.msra.mxu0 %v2483_v4 }
 0x14a   : > { %2288 = vmatprep.subr.bf16.mxu1 %v2603_v43  ;;  %2312 = vmatprep.subr.bf16.mxu0 %v2603_v43 }
 0x14b   : > { %2290 = vmatprep.mubr.msk.bf16.mxu1 %vm2604_vm1, %v2603_v43  ;;  %2314 = vmatprep.mubr.msk.bf16.mxu0 %vm2604_vm1, %v2603_v43 }
 0x14d   : > { %2289 = vmatpush3.bf16.msra.mxu1 %v2484_v7  ;;  %2313 = vmatpush3.bf16.msra.mxu0 %v2485_v8 }
 0x14e   : > { %2302 = vmatprep.subr.bf16.mxu1 %v2603_v43  ;;  %2326 = vmatprep.subr.bf16.mxu0 %v2603_v43 }
 0x150   : > { %2291 = vmatmul.mubr.msk.bf16.vlgmr.msra.gmra.mrb[32].mxu1 %vm789_vm2, %v1203_v11  ;;  %2315 = vmatmul.mubr.msk.bf16.vlgmr.msra.gmra.mrb[32].mxu0 %vm789_vm2, %v1389_v12 }
 0x151   : > { %2303 = vmatpush3.bf16.msra.mxu1 %v2486_v9  ;;  %2327 = vmatpush3.bf16.msra.mxu0 %v2487_v10 }
 0x152   : > { %2304 = vmatprep.subr.bf16.mxu1 %v2603_v43  ;;  %2328 = vmatprep.subr.bf16.mxu0 %v2603_v43 }
 0x153   : > { %2306 = vmatprep.mubr.msk.bf16.mxu1 %vm2604_vm1, %v2603_v43  ;;  %2330 = vmatprep.mubr.msk.bf16.mxu0 %vm2604_vm1, %v2603_v43 }
 0x155   : > { %2305 = vmatpush3.bf16.msra.mxu1 %v2488_v13  ;;  %2329 = vmatpush3.bf16.msra.mxu0 %v2489_v14 }
 0x156   : > { %2318 = vmatprep.subr.bf16.mxu1 %v2603_v43  ;;  %2342 = vmatprep.subr.bf16.mxu0 %v2603_v43 }
 0x158   : > { %2307 = vmatmul.mubr.msk.bf16.vlgmr.msra.gmra.mrb[36].mxu1 %vm789_vm2, %v1327_v17  ;;  %2331 = vmatmul.mubr.msk.bf16.vlgmr.msra.gmra.mrb[36].mxu0 %vm789_vm2, %v1513_v18 }
 0x159   : > { %2319 = vmatpush3.bf16.msra.mxu1 %v2490_v15  ;;  %2343 = vmatpush3.bf16.msra.mxu0 %v2491_v16 }
 0x15a   : > { %2320 = vmatprep.subr.bf16.mxu1 %v2603_v43  ;;  %2344 = vmatprep.subr.bf16.mxu0 %v2603_v43 }
 0x15b   : > { %2322 = vmatprep.mubr.msk.bf16.mxu1 %vm2604_vm1, %v2603_v43  ;;  %2346 = vmatprep.mubr.msk.bf16.mxu0 %vm2604_vm1, %v2603_v43 }
 0x15d   : > { %2321 = vmatpush3.bf16.msra.mxu1 %v2492_v19  ;;  %2345 = vmatpush3.bf16.msra.mxu0 %v2493_v20 }
 0x15e   : > { %2334 = vmatprep.subr.bf16.mxu1 %v2603_v43  ;;  %2358 = vmatprep.subr.bf16.mxu0 %v2603_v43 }
 0x160   : > { %2323 = vmatmul.mubr.msk.bf16.vlgmr.msra.gmra.mrb[40].mxu1 %vm789_vm2, %v1451_v22  ;;  %2347 = vmatmul.mubr.msk.bf16.vlgmr.msra.gmra.mrb[40].mxu0 %vm789_vm2, %v1637_v23 }
 0x161   : > { %2335 = vmatpush3.bf16.msra.mxu1 %v2494_v21  ;;  %2338 = vmatprep.mubr.msk.bf16.mxu1 %vm2604_vm1, %v2603_v43 }
 0x162   : > { %2336 = vmatprep.subr.bf16.mxu1 %v2603_v43  ;;  %2366 = vmatprep.mubr.msk.bf16.mxu0 %vm2604_vm1, %v2603_v43 }
 0x163   : > { %2359 = vmatpush3.bf16.msra.mxu0 %v2498_v29 }
 0x164   : > { %2360 = vmatprep.subr.bf16.mxu0 %v2603_v43 }
 0x165   : > { %2337 = vmatpush3.bf16.msra.mxu1 %v2495_v24 }
 0x166   : > { %2350 = vmatprep.subr.bf16.mxu1 %v2603_v43 }
 0x167   : > { %2361 = vmatpush3.bf16.msra.mxu0 %v2499_v30 }
 0x168   : > { %2339 = vmatmul.mubr.msk.bf16.vlgmr.msra.gmra.mrb[44].mxu1 %vm789_vm2, %v1575_v26  ;;  %2362 = vmatprep.subr.bf16.mxu0 %v2603_v43 }
 0x169   : > { %2351 = vmatpush3.bf16.msra.mxu1 %v2496_v25  ;;  %2354 = vmatprep.mubr.msk.bf16.mxu1 %vm2604_vm1, %v2603_v43 }
 0x16a   : > { %2352 = vmatprep.subr.bf16.mxu1 %v2603_v43 }
 0x16b   : > { %2363 = vmatpush3.bf16.msra.mxu0 %v2500_v31 }
 0x16c   : > { %2364 = vmatprep.subr.bf16.mxu0 %v2603_v43 }
 0x16d   : > { %2353 = vmatpush3.bf16.msra.mxu1 %v2497_v27 }
 0x16f   : > { %2365 = vmatpush3.bf16.msra.mxu0 %v2501_v32 }
 0x170   : > { %2355 = vmatmul.mubr.msk.bf16.vlgmr.msra.gmra.mrb[48].mxu1 %vm789_vm2, %v1699_v28 }
 0x203   : > { %v827_v33 = vpop.f32.mrb[16].mxu1  ;;  %v943_v34 = vpop.f32.mrb[16].mxu0 }
 0x204   : > { %v2236_v35 = vpop.f32.mrb[17].mxu1  ;;  %v2252_v36 = vpop.f32.mrb[17].mxu0 }
 0x205   : > { %v830_v37 = vpop.f32.mrb[18].mxu1  ;;  %v946_v38 = vpop.f32.mrb[18].mxu0 }
 0x206   : > { %v2237_v39 = vpop.f32.mrb[19].mxu1  ;;  %v2253_v40 = vpop.f32.mrb[19].mxu0 }
 0x20b   : > { %v881_v41 = vpop.f32.mrb[20].mxu1  ;;  %v1067_v42 = vpop.f32.mrb[20].mxu0 }
 0x20c   : > { %v882_v44 = vadd.f32 %v881_v41, %v827_v33  ;;  %v2244_v45 = vpop.f32.mrb[21].mxu1  ;;  %v2268_v46 = vpop.f32.mrb[21].mxu0 }
 0x20d   : > { %v884_v47 = vpop.f32.mrb[22].mxu1  ;;  %v1070_v43 = vpop.f32.mrb[22].mxu0  ;;  %v1756_v45 = vld [vmem:[%s3121_s4] sm:$0x1] }
 0x20e   : > { %v2245_v48 = vpop.f32.mrb[23].mxu1  ;;  %v2269_v50 = vpop.f32.mrb[23].mxu0  ;;  %v949_v51 = vadd.f32 %v943_v34, %v882_v44 }
 0x213   : > { %v1005_v52 = vpop.f32.mrb[24].mxu1  ;;  %v1191_v49 = vpop.f32.mrb[24].mxu0 }
 0x214   : > { %v1011_v53 = vadd.f32 %v1005_v52, %v949_v51  ;;  %v2260_v54 = vpop.f32.mrb[25].mxu1  ;;  %v2284_v55 = vpop.f32.mrb[25].mxu0 }
 0x215   : > { %v1008_v56 = vpop.f32.mrb[26].mxu1  ;;  %v1194_v57 = vpop.f32.mrb[26].mxu0 }
 0x216   : > { %v2261_v58 = vpop.f32.mrb[27].mxu1  ;;  %v2285_v59 = vpop.f32.mrb[27].mxu0  ;;  %v1073_v60 = vadd.f32 %v1067_v42, %v1011_v53 }
 0x21b   : > { %v1129_v61 = vpop.f32.mrb[28].mxu1  ;;  %v1315_v62 = vpop.f32.mrb[28].mxu0 }
 0x21c   : > { %v1135_v63 = vadd.f32 %v1129_v61, %v1073_v60  ;;  %v2276_v0 = vpop.f32.mrb[29].mxu1  ;;  %v2300_v1 = vpop.f32.mrb[29].mxu0 }
 0x21d   : > { %v1132_v2 = vpop.f32.mrb[30].mxu1  ;;  %v1318_v3 = vpop.f32.mrb[30].mxu0 }
 0x21e   : > { %v2277_v4 = vpop.f32.mrb[31].mxu1  ;;  %v2301_v5 = vpop.f32.mrb[31].mxu0  ;;  %v1197_v6 = vadd.f32 %v1191_v49, %v1135_v63  ;;  %v1770_v49 = vld [vmem:[%s3123_s6] sm:$0x1] }
 0x223   : > { %v1253_v7 = vpop.f32.mrb[32].mxu1  ;;  %v1439_v8 = vpop.f32.mrb[32].mxu0 }
 0x224   : > { %v1259_v9 = vadd.f32 %v1253_v7, %v1197_v6  ;;  %v2292_v10 = vpop.f32.mrb[33].mxu1  ;;  %v2316_v11 = vpop.f32.mrb[33].mxu0 }
 0x225   : > { %v1256_v12 = vpop.f32.mrb[34].mxu1  ;;  %v1442_v13 = vpop.f32.mrb[34].mxu0 }
 0x226   : > { %v2293_v14 = vpop.f32.mrb[35].mxu1  ;;  %v2317_v15 = vpop.f32.mrb[35].mxu0  ;;  %v1321_v16 = vadd.f32 %v1315_v62, %v1259_v9 }
 0x22b   : > { %v1377_v17 = vpop.f32.mrb[36].mxu1  ;;  %v1563_v18 = vpop.f32.mrb[36].mxu0 }
 0x22c   : > { %v1383_v19 = vadd.f32 %v1377_v17, %v1321_v16  ;;  %v2308_v20 = vpop.f32.mrb[37].mxu1  ;;  %v2332_v21 = vpop.f32.mrb[37].mxu0 }
 0x22d   : > { %v1380_v22 = vpop.f32.mrb[38].mxu1  ;;  %v1566_v23 = vpop.f32.mrb[38].mxu0 }
 0x22e   : > { %v2309_v24 = vpop.f32.mrb[39].mxu1  ;;  %v2333_v25 = vpop.f32.mrb[39].mxu0  ;;  %v1445_v26 = vadd.f32 %v1439_v8, %v1383_v19 }
 0x233   : > { %v1501_v27 = vpop.f32.mrb[40].mxu1  ;;  %v1687_v28 = vpop.f32.mrb[40].mxu0 }
 0x234   : > { %v1507_v29 = vadd.f32 %v1501_v27, %v1445_v26  ;;  %v2324_v30 = vpop.f32.mrb[41].mxu1  ;;  %v2348_v31 = vpop.f32.mrb[41].mxu0 }
 0x235   : > { %v1504_v32 = vpop.f32.mrb[42].mxu1  ;;  %v1690_v33 = vpop.f32.mrb[42].mxu0 }
 0x236   : > { %v2325_v34 = vpop.f32.mrb[43].mxu1  ;;  %v2349_v35 = vpop.f32.mrb[43].mxu0  ;;  %v1569_v36 = vadd.f32 %v1563_v18, %v1507_v29 }
 0x23b   : > { %v1625_v37 = vpop.f32.mrb[44].mxu1 }
 0x23c   : > { %v1631_v38 = vadd.f32 %v1625_v37, %v1569_v36  ;;  %v2340_v39 = vpop.f32.mrb[45].mxu1 }
 0x23d   : > { %v1628_v40 = vpop.f32.mrb[46].mxu1 }
 0x23e   : > { %v2341_v41 = vpop.f32.mrb[47].mxu1  ;;  %v1693_v42 = vadd.f32 %v1687_v28, %v1631_v38 }
 0x243   : > { %v1749_v44 = vpop.f32.mrb[48].mxu1 }
 0x244   : > { %v1755_v46 = vadd.f32 %v1749_v44, %v1693_v42  ;;  %v2356_v47 = vpop.f32.mrb[49].mxu1 }
 0x245   : > { %v1752_v43 = vpop.f32.mrb[50].mxu1 }
 0x246   : > { %v1757_v48 = vadd.f32 %v1756_v45, %v1755_v46  ;;  %v2357_v50 = vpop.f32.mrb[51].mxu1 }
 0x248   : > { %v1758_v51 = vmax.f32 %v1757_v48, 0.0 }
 0x24a   : > { %v1761_v52 = vpack.c.bf16 %v1758_v51, %v1758_v51  ;;  %1760 = vst.msk [vmem:[%s307_s20] sm:$0x1] %vm1759_vm3, %v1758_v51 }
 0x24c   : > { %2367 = vmatmul.mubr.msk.bf16.vlgmr.msra.gmra.mrb[44].mxu0 %vm1795_vm4, %v1761_v52 }
 0x31f   : > { %v1833_v53 = vpop.f32.mrb[44].mxu0 }
 0x320   : > { %v1834_v54 = vadd.f32 %v1833_v53, %v1770_v49  ;;  %v2368_v55 = vpop.f32.mrb[45].mxu0 }
 0x321   : > { %v1836_v56 = vpop.f32.mrb[46].mxu0 }
 0x322   : > { %v2369_v57 = vpop.f32.mrb[47].mxu0  ;;  %v1840_v58 = vsel %vm1839_vm5, %v1834_v54, -inf }
 0x323   : > { %1841 = vmax.xlane.f32.xlu0 %v1840_v58 }
 0x3b0   : > { %v1842_v59 = vpop.xlane.xlu0 %1841 }
 0x3b1   : > { %v1843_v60 = vsub.f32 %v1834_v54, %v1842_v59 }
 0x3b3   : > { %v1844_v61 = vmul.f32 1.442695, %v1843_v60 }
 0x3b5   : > { %2502 = vpow2.f32 %v1844_v61 }
 0x3bf   : > { %v2503_v62 = vpop.eup %2502 }
 0x3c0   : > { %v1846_v63 = vsel %vm1839_vm5, %v2503_v62, 0.0 }
 0x3c1   : > { %1847 = vadd.xlane.f32.xlu0 %v1846_v63 }
 0x3c2   : > { %2519 = shalt.err (!%p2516_p3)
}
 0x3c3   : > { %s2520_s20 = scalar_lea.hbm %s3047_s25, 16  ;;  %s2524_s19 = scalar_lea.hbm %s3125_s8, 32 }
 0x3c4   : > { %p2521_p4 = scmp.ne.s32.totalorder %s3047_s25, %s2520_s20  ;;  %p2525_p9 = scmp.lt.u32.totalorder %s3047_s25, %s3125_s8 }
 0x3c5   : > { %p2526_p10 = scmp.lt.u32.totalorder %s2524_s19, %s2520_s20  ;;  %p2528_p12 = scmp.lt.u32.totalorder %s2520_s20, %s3047_s25 }
 0x3c6   : > { %p2522_p7 = pnand %p2521_p4, %p2690_p5 }
 0x3c7   : > { %p2527_p11 = por %p2526_p10, %p2525_p9 }
 0x3c8   : > { %p2523_p8 = pneg %p2522_p7 }
 0x3c9   : > { %p2529_p13 = por %p2528_p12, %p2527_p11 }
 0x3cb   : > { %p2530_p0 = pnand %p2529_p13, %p2523_p8 }
 0x3cd   : > { %2533 = shalt.err (!%p2530_p0)
}
 0x3ce   : > { %2371 = dma.vmem_to_hbm [thread:$0]  (%p2690_p5), %s1885_s10, 16, %s3047_s25, %s1859_s26  }
 0x3cf   : > { %s301_s12 = scalar_lea.vmem [#allocation2], %s3033_s18  ;;  %s3073_s24 = scalar_lea.hbm %s3124_s7, %s2132_s23 }
 0x3d0   : > { %s1871_s21 = sshll.u32 %s301_s12, 4  ;;  %s1855_s25 = scalar_lea.sflag [#allocation3], %s3033_s18  ;;  %s3075_s21 = int_to_ptr.vmem [resolvable:$true] %s1871_s21 }
 0x3d1   : > { %s2534_s10 = scalar_lea.vmem %s3075_s21, 16  ;;  %s2606_s26 = smov [#allocation2]  }
 0x3d2   : > { %p2535_p1 = scmp.ne.s32.totalorder %s3075_s21, %s2534_s10  ;;  %s2538_s9 = sshll.u32 %s2606_s26, 4  ;;  %s2539_s9 = int_to_ptr.vmem [resolvable:$false] %s2538_s9 }
 0x3d3   : > { %s2540_s19 = scalar_lea.vmem %s2539_s9, 32  ;;  %p2541_p4 = scmp.lt.s32.totalorder %s3075_s21, %s2539_s9 }
 0x3d4   : > { %p2536_p2 = pnand %p2535_p1, %p2690_p5  ;;  %p2542_p7 = scmp.lt.s32.totalorder %s2540_s19, %s2534_s10 }
 0x3d6   : > { %p2537_p3 = pneg %p2536_p2  ;;  %p2543_p8 = por %p2542_p7, %p2541_p4 }
 0x3d8   : > { %p2544_p9 = pnand %p2543_p8, %p2537_p3 }
 0x44e   : > { %v1848_v0 = vpop.xlane.xlu0 %1847 }
 0x44f   : > { %2504 = vlog2.f32 %v1848_v0 }
 0x459   : > { %v2505_v1 = vpop.eup %2504 }
 0x45a   : > { %v1850_v2 = vmul.f32 0.6931472, %v2505_v1 }
 0x45c   : > { %v1851_v3 = vadd.f32 %v1850_v2, %v1842_v59 }
 0x45e   : > { %v1852_v4 = vsub.f32 %v1834_v54, %v1851_v3 }
 0x460   : > { %1853 = vst.msk [vmem:[%s301_s12] sm:$0x1] %vm1839_vm5, %v1852_v4 }
 0x461   : > { %2547 = shalt.err (!%p2544_p9)
}
 0x462   : > { %s2548_s18 = scalar_lea.hbm %s3073_s24, 16  ;;  %s2552_s17 = scalar_lea.hbm %s3124_s7, 32 }
 0x463   : > { %p2549_p10 = scmp.ne.s32.totalorder %s3073_s24, %s2548_s18  ;;  %p2553_p13 = scmp.lt.u32.totalorder %s3073_s24, %s3124_s7 }
 0x464   : > { %p2554_p0 = scmp.lt.u32.totalorder %s2552_s17, %s2548_s18  ;;  %p2556_p2 = scmp.lt.u32.totalorder %s2548_s18, %s3073_s24 }
 0x465   : > { %p2550_p11 = pnand %p2549_p10, %p2690_p5 }
 0x466   : > { %p2555_p1 = por %p2554_p0, %p2553_p13 }
 0x467   : > { %p2551_p12 = pneg %p2550_p11 }
 0x468   : > { %p2557_p3 = por %p2556_p2, %p2555_p1 }
 0x46a   : > { %p2558_p4 = pnand %p2557_p3, %p2551_p12 }
 0x46c   : > { %2561 = shalt.err (!%p2558_p4)
}
 0x46d   : > { %2370 = dma.vmem_to_hbm [thread:$0]  (%p2690_p5), %s3075_s21, 16, %s3073_s24, %s1855_s25  }
 0x46e PF: > { %p2381_p7 = scmp.ge.s32.totalorder %s2600_s30, 2  ;;  %s1896_s22 = sand.u32 1, %s2588_s27  }
 0x46f   : > { %s1897_s10 = scalar_lea.sflag [#allocation3], %s1896_s22 }
 0x470   : > { %p2375_p8 = pnand %p2381_p7, %p2694_p6 }
 0x472   : > { %2579 = dma.done.wait (!%p2375_p8), %s1897_s10, 16  }
 0x473   : > { %2581 = vsyncadd (!%p2375_p8), %s1897_s10, 4294967280  ;;  %s1905_s26 = scalar_lea.sflag [#allocation5], %s1896_s22 }
 0x474   : > { %2583 = dma.done.wait (!%p2375_p8), %s1905_s26, 16  }
 0x475   : > { %2585 = vsyncadd (!%p2375_p8), %s1905_s26, 4294967280  ;;  %p22_p5 = scmp.ge.s32.totalorder %s2677_s11, 4   ;;  %s3128_s27 = smov %s2592_s28 }
 0x476   : > { %s3129_s28 = smov %s2596_s29  ;;  %s3130_s29 = smov %s2688_s14 }
 0x477   : > { %s3131_s30 = smov %s2677_s11  ;;  %24 = sbr.rel (!%p22_p5) target bundleno = 5 (0x5), region = 115 }
 0x47e   :  { %1909 = vsyncpa [#allocation3], 1 }
 0x47f   :  { %1911 = vsyncpa [#allocation3 + $0x1], 1 }
 0x480   :  { %1912 = vsyncpa [#allocation5], 1 }
 0x481   :  { %1914 = vsyncpa [#allocation5 + $0x1], 1 }

</bundles_post_ra>
